<compile_context>
chip_gen: v7x
topology: tpu7x:2x2x1
jax: 0.10.0
libtpu: 0.0.40
codegen_flags: <defaults>
</compile_context>

<pallas_src>
import itertools

import numpy as np
import jax
import jax.numpy as jnp
from jax.experimental import pallas as pl
from jax.experimental.pallas import tpu as pltpu

# ----- module configuration (mirrors LagrangeInterp.__init__) -----
M = 2                                                              # interp_dim
D = 2                                                              # interp_degree
MESH_BOUND = np.array([[0.0, 0.0], [1.0, 1.0]], dtype=np.float64)  # shape [2, m]
MESH_SIZE = np.array([4, 4], dtype=np.int64)                       # shape [m]

COE_SHAPE = tuple(int(s) * D + 1 for s in MESH_SIZE)               # (mesh_size*d+1, ...)
T = int(np.prod(COE_SHAPE))                                        # 81 for this config


def _row_major_strides(shape):
    st = [1] * len(shape)
    for i in range(len(shape) - 2, -1, -1):
        st[i] = st[i + 1] * shape[i + 1]
    return tuple(st)


STRIDES = _row_major_strides(COE_SHAPE)
COMBOS = list(itertools.product(range(D + 1), repeat=M))           # (d+1)^m node combos
OFFSETS = [sum(c[j] * STRIDES[j] for j in range(M)) for c in COMBOS]
NC = len(COMBOS)                                                   # 9
NC_PAD = ((NC + 7) // 8) * 8                                       # 16 (sublane multiple)

# cell (= mesh element) indexing
CELL_SHAPE = tuple(int(s) for s in MESH_SIZE)
CELL_STRIDES = _row_major_strides(CELL_SHAPE)
NUM_CELLS = int(np.prod(CELL_SHAPE))                               # 16
NUM_CELLS_PAD = ((NUM_CELLS + 7) // 8) * 8                         # 16

# stacked-basis block: row j*(D+1)+i holds the dim-j Lagrange basis at node i
STACK_ROWS = ((M * (D + 1) + 7) // 8) * 8                          # 8
NODE_OF_ROW = [(r % (D + 1)) if r < M * (D + 1) else 0 for r in range(STACK_ROWS)]

BN = 4096                                                          # points per grid step (lane dim)


def _basis_affine_consts():
    """Per-row affine factors so basis = prod_l (ps*S_l + T_l) with no selects.

    For stack row r (node n = NODE_OF_ROW[r]) and factor l:
      n != l : (ps - l)/(n - l)  ->  S = 1/(n-l), T = -l/(n-l)
      n == l : 1                 ->  S = 0,       T = 1
    """
    c = np.zeros((STACK_ROWS, 2 * (D + 1)), dtype=np.float32)
    for r in range(STACK_ROWS):
        n = NODE_OF_ROW[r]
        for l in range(D + 1):
            if n == l:
                s, t = 0.0, 1.0
            else:
                s = 1.0 / (n - l)
                t = -float(l) / (n - l)
            c[r, 2 * l] = s
            c[r, 2 * l + 1] = t
    return c


def _expand_matrix():
    """0/1 matrix mapping the stacked basis rows to combo rows.

    Row j*NC_PAD + c picks basis row j*(D+1) + COMBOS[c][j]; padding rows are 0,
    so padded combos contribute nothing after the final multiply + reduce.
    """
    r = np.zeros((M * NC_PAD, STACK_ROWS), dtype=np.float32)
    for j in range(M):
        for ci, combo in enumerate(COMBOS):
            r[j * NC_PAD + ci, j * (D + 1) + combo[j]] = 1.0
    return r


BASIS_CONSTS = _basis_affine_consts()     # (STACK_ROWS, 2*(D+1))
EXPAND_MAT = _expand_matrix()             # (M*NC_PAD, STACK_ROWS)


def lagrange_kernel(x_ref, coe_ref, expand_ref, consts_ref, o_ref):
    x = x_ref[...]                        # (M, BN) f32, points lane-major
    bn = x.shape[1]

    # ---- 1. per-dim coordinate mapping -> containing cell + local coord in [0, D]
    cell_idx = jnp.zeros((1, bn), jnp.int32)
    ps_rows = []
    for j in range(M):
        lo = float(MESH_BOUND[0, j])
        hi = float(MESH_BOUND[1, j])
        msj = float(MESH_SIZE[j])
        xj = x[j:j + 1, :]
        xj = (xj - lo) * (msj / (hi - lo))            # map into [0, mesh_size_j]
        xj = jnp.clip(xj, 0.0, msj)                   # clamp to domain
        ej = jnp.minimum(jnp.floor(xj), msj - 1.0)    # right boundary -> last cell
        ps_rows.append((xj - ej) * float(D))          # local coord in [0, d]
        cell_idx = cell_idx + ej.astype(jnp.int32) * int(CELL_STRIDES[j])

    # ---- 2. gather the (d+1)^m cell coefficients for every point:
    # one-hot over the 16 cell indices + ONE small MXU matmul (K = NUM_CELLS).
    cell_iota = jax.lax.broadcasted_iota(jnp.int32, (NUM_CELLS_PAD, bn), 0)
    onehot = (cell_iota == cell_idx).astype(jnp.float32)              # (NUM_CELLS_PAD, bn)
    gathered = jnp.dot(coe_ref[...], onehot,
                       preferred_element_type=jnp.float32)            # (NC_PAD, bn)

    # ---- 3. all 1-D Lagrange bases of every dim on ONE (STACK_ROWS, bn) block.
    # ps_stack row j*(D+1)+i = local coord of dim j; basis row = L_i(ps_j).
    row_iota = jax.lax.broadcasted_iota(jnp.int32, (STACK_ROWS, bn), 0)
    ps_stack = jnp.broadcast_to(ps_rows[M - 1], (STACK_ROWS, bn))
    for j in range(M - 2, -1, -1):
        ps_stack = jnp.where(row_iota < (j + 1) * (D + 1), ps_rows[j], ps_stack)
    consts = consts_ref[...]                                           # (STACK_ROWS, 2*(D+1))
    basis = ps_stack * consts[:, 0:1] + consts[:, 1:2]
    for l in range(1, D + 1):
        basis = basis * (ps_stack * consts[:, 2 * l:2 * l + 1]
                         + consts[:, 2 * l + 1:2 * l + 2])

    # ---- 4. expand bases to combo rows (tiny constant MXU matmul), build the
    # tensor-product weights as a full (NC_PAD, bn) block, and reduce over
    # sublanes (XLU) -> lane-dense (1, bn) output row.
    ex = jnp.dot(expand_ref[...], basis,
                 preferred_element_type=jnp.float32)                  # (M*NC_PAD, bn)
    w = ex[0:NC_PAD, :]
    for j in range(1, M):
        w = w * ex[j * NC_PAD:(j + 1) * NC_PAD, :]
    o_ref[...] = jnp.sum(w * gathered, axis=0, keepdims=True)


def lagrange_interp(inputs, interp_coe):
    """inputs: [..., m] float32; interp_coe: COE_SHAPE float32."""
    size = inputs.shape
    if M == 1 and size[-1] != 1:
        inputs = inputs[..., None]
        size = inputs.shape

    # points lane-major: (M, N), padded along the lane (point) axis
    x = inputs.reshape(-1, M).astype(jnp.float32).T
    n = x.shape[1]
    n_pad = ((n + BN - 1) // BN) * BN
    x_p = jnp.pad(x, ((0, 0), (0, n_pad - n)))

    # Per-cell coefficient table: coe_cells[c, cell] = coe_flat[base(cell) + OFFSETS[c]]
    coe_flat = interp_coe.reshape(-1).astype(jnp.float32)
    cell_mi = np.stack(np.unravel_index(np.arange(NUM_CELLS), CELL_SHAPE), axis=0)  # (M, NUM_CELLS)
    cell_base = sum(cell_mi[j] * D * STRIDES[j] for j in range(M))                  # (NUM_CELLS,)
    gather_idx = np.asarray(OFFSETS, dtype=np.int64)[:, None] + cell_base[None, :]  # (NC, NUM_CELLS)
    coe_cells = coe_flat[jnp.asarray(gather_idx)]
    coe_cells = jnp.pad(coe_cells,
                        ((0, NC_PAD - NC), (0, NUM_CELLS_PAD - NUM_CELLS)))          # (NC_PAD, NUM_CELLS_PAD)

    expand_mat = jnp.asarray(EXPAND_MAT)          # (M*NC_PAD, STACK_ROWS)
    basis_consts = jnp.asarray(BASIS_CONSTS)      # (STACK_ROWS, 2*(D+1))

    out = pl.pallas_call(
        lagrange_kernel,
        out_shape=jax.ShapeDtypeStruct((1, n_pad), jnp.float32),
        grid=(n_pad // BN,),
        in_specs=[
            pl.BlockSpec((M, BN), lambda i: (0, i)),                          # point block
            pl.BlockSpec((NC_PAD, NUM_CELLS_PAD), lambda i: (0, 0)),          # per-cell coe table (resident)
            pl.BlockSpec((M * NC_PAD, STACK_ROWS), lambda i: (0, 0)),         # combo expansion matrix
            pl.BlockSpec((STACK_ROWS, 2 * (D + 1)), lambda i: (0, 0)),        # basis affine constants
        ],
        out_specs=pl.BlockSpec((1, BN), lambda i: (0, i)),                    # lane-dense output block
        compiler_params=pltpu.CompilerParams(dimension_semantics=("parallel",)),
    )(x_p, coe_cells, expand_mat, basis_consts)
    return out[0, :n].reshape(size[:-1])


def ref_numpy(inputs, coe):
    """Plain numpy reference with identical semantics (float64)."""
    x = np.asarray(inputs, dtype=np.float64).reshape(-1, M)
    coe_flat = np.asarray(coe, dtype=np.float64).reshape(-1)
    n = x.shape[0]
    elem = np.zeros((n, M))
    ps = np.zeros((n, M))
    for j in range(M):
        lo, hi = float(MESH_BOUND[0, j]), float(MESH_BOUND[1, j])
        msj = float(MESH_SIZE[j])
        xj = (x[:, j] - lo) / (hi - lo) * msj
        xj = np.clip(xj, 0.0, msj)
        ej = np.minimum(np.floor(xj), msj - 1.0)
        elem[:, j] = ej
        ps[:, j] = (xj - ej) * D
    out = np.zeros(n)
    for combo in itertools.product(range(D + 1), repeat=M):
        w = np.ones(n)
        idx = np.zeros(n)
        for j in range(M):
            i = combo[j]
            bj = np.ones(n)
            for l in range(D + 1):
                if l != i:
                    bj *= (ps[:, j] - l) / (i - l)
            w *= bj
            idx += (elem[:, j] * D + i) * STRIDES[j]
        out += w * coe_flat[idx.astype(np.int64)]
    return out


if __name__ == "__main__":
    key = jax.random.PRNGKey(0)
    k_coe, k_in = jax.random.split(key)

    # nn.Parameter ~ Tensor(mesh_size*d+1).normal_()  -> deterministic normal init
    interp_coe = jax.random.normal(k_coe, COE_SHAPE, dtype=jnp.float32)
    # points in the interpolation domain [0,1]^m, shape [..., m]
    inputs = jax.random.uniform(k_in, (2, 16, M), dtype=jnp.float32)

    out = lagrange_interp(inputs, interp_coe)
    out = jax.block_until_ready(out)
    assert out.shape == (2, 16)

    ref = ref_numpy(np.asarray(inputs), np.asarray(interp_coe))
    np.testing.assert_allclose(
        np.asarray(out).reshape(-1), ref, rtol=2e-3, atol=2e-3
    )
    print("KERNEL_OK")
</pallas_src>

<mosaic_0001>
module attributes {stable_mosaic.version = 11 : i64} {
  func.func @lagrange_kernel(%arg0: i32, %arg1: memref<2x4096xf32, #tpu.memory_space<vmem>>, %arg2: memref<16x16xf32, #tpu.memory_space<vmem>>, %arg3: memref<32x8xf32, #tpu.memory_space<vmem>>, %arg4: memref<8x6xf32, #tpu.memory_space<vmem>>, %arg5: memref<1x4096xf32, #tpu.memory_space<vmem>>) attributes {dimension_semantics = [#tpu.dimension_semantics<parallel>], iteration_bounds = array<i64: 1>, scalar_prefetch = 0 : i64, scratch_operands = 0 : i64, tpu.core_type = #tpu.core_type<tc>, window_params = [{transform_indices = @transform_0, window_bounds = array<i64: 2, 4096>}, {pipeline_mode = #tpu.pipeline_mode<synchronous>, transform_indices = @transform_1, window_bounds = array<i64: 16, 16>}, {pipeline_mode = #tpu.pipeline_mode<synchronous>, transform_indices = @transform_2, window_bounds = array<i64: 32, 8>}, {pipeline_mode = #tpu.pipeline_mode<synchronous>, transform_indices = @transform_3, window_bounds = array<i64: 8, 6>}, {transform_indices = @transform_4, window_bounds = array<i64: 1, 4096>}]} {
    %c0 = arith.constant 0 : index
    %c0_0 = arith.constant 0 : index
    %0 = vector.load %arg1[%c0, %c0_0] : memref<2x4096xf32, #tpu.memory_space<vmem>>, vector<2x4096xf32>
    %c0_i32 = arith.constant 0 : i32
    %1 = vector.broadcast %c0_i32 : i32 to vector<1x4096xi32>
    %2 = vector.extract_strided_slice %0 {offsets = [0, 0], sizes = [1, 4096], strides = [1, 1]} : vector<2x4096xf32> to vector<1x4096xf32>
    %cst = arith.constant 0.000000e+00 : f32
    %3 = vector.broadcast %cst : f32 to vector<1x4096xf32>
    %4 = arith.subf %2, %3 : vector<1x4096xf32>
    %cst_1 = arith.constant 4.000000e+00 : f32
    %5 = vector.broadcast %cst_1 : f32 to vector<1x4096xf32>
    %6 = arith.mulf %4, %5 : vector<1x4096xf32>
    %cst_2 = arith.constant 0.000000e+00 : f32
    %cst_3 = arith.constant 4.000000e+00 : f32
    %7 = vector.broadcast %cst_2 : f32 to vector<1x4096xf32>
    %8 = arith.maximumf %7, %6 : vector<1x4096xf32>
    %9 = vector.broadcast %cst_3 : f32 to vector<1x4096xf32>
    %10 = arith.minimumf %9, %8 : vector<1x4096xf32>
    %11 = math.floor %10 : vector<1x4096xf32>
    %cst_4 = arith.constant 3.000000e+00 : f32
    %12 = vector.broadcast %cst_4 : f32 to vector<1x4096xf32>
    %13 = arith.minimumf %11, %12 : vector<1x4096xf32>
    %14 = arith.subf %10, %13 : vector<1x4096xf32>
    %cst_5 = arith.constant 2.000000e+00 : f32
    %15 = vector.broadcast %cst_5 : f32 to vector<1x4096xf32>
    %16 = arith.mulf %14, %15 : vector<1x4096xf32>
    %17 = arith.fptosi %13 : vector<1x4096xf32> to vector<1x4096xi32>
    %c4_i32 = arith.constant 4 : i32
    %18 = vector.broadcast %c4_i32 : i32 to vector<1x4096xi32>
    %19 = arith.muli %17, %18 : vector<1x4096xi32>
    %20 = arith.addi %1, %19 : vector<1x4096xi32>
    %21 = vector.extract_strided_slice %0 {offsets = [1, 0], sizes = [1, 4096], strides = [1, 1]} : vector<2x4096xf32> to vector<1x4096xf32>
    %cst_6 = arith.constant 0.000000e+00 : f32
    %22 = vector.broadcast %cst_6 : f32 to vector<1x4096xf32>
    %23 = arith.subf %21, %22 : vector<1x4096xf32>
    %cst_7 = arith.constant 4.000000e+00 : f32
    %24 = vector.broadcast %cst_7 : f32 to vector<1x4096xf32>
    %25 = arith.mulf %23, %24 : vector<1x4096xf32>
    %cst_8 = arith.constant 0.000000e+00 : f32
    %cst_9 = arith.constant 4.000000e+00 : f32
    %26 = vector.broadcast %cst_8 : f32 to vector<1x4096xf32>
    %27 = arith.maximumf %26, %25 : vector<1x4096xf32>
    %28 = vector.broadcast %cst_9 : f32 to vector<1x4096xf32>
    %29 = arith.minimumf %28, %27 : vector<1x4096xf32>
    %30 = math.floor %29 : vector<1x4096xf32>
    %cst_10 = arith.constant 3.000000e+00 : f32
    %31 = vector.broadcast %cst_10 : f32 to vector<1x4096xf32>
    %32 = arith.minimumf %30, %31 : vector<1x4096xf32>
    %33 = arith.subf %29, %32 : vector<1x4096xf32>
    %cst_11 = arith.constant 2.000000e+00 : f32
    %34 = vector.broadcast %cst_11 : f32 to vector<1x4096xf32>
    %35 = arith.mulf %33, %34 : vector<1x4096xf32>
    %36 = arith.fptosi %32 : vector<1x4096xf32> to vector<1x4096xi32>
    %c1_i32 = arith.constant 1 : i32
    %37 = vector.broadcast %c1_i32 : i32 to vector<1x4096xi32>
    %38 = arith.muli %36, %37 : vector<1x4096xi32>
    %39 = arith.addi %20, %38 : vector<1x4096xi32>
    %40 = tpu.iota {dimensions = array<i32: 0>} : vector<16x4096xi32>
    %41 = vector.broadcast %39 : vector<1x4096xi32> to vector<16x4096xi32>
    %42 = arith.cmpi eq, %40, %41 : vector<16x4096xi32>
    %43 = arith.extui %42 : vector<16x4096xi1> to vector<16x4096xi32>
    %44 = arith.sitofp %43 : vector<16x4096xi32> to vector<16x4096xf32>
    %c0_12 = arith.constant 0 : index
    %c0_13 = arith.constant 0 : index
    %45 = vector.load %arg2[%c0_12, %c0_13] : memref<16x16xf32, #tpu.memory_space<vmem>>, vector<16x16xf32>
    %cst_14 = arith.constant dense<0.000000e+00> : vector<16x4096xf32>
    %46 = tpu.matmul %45, %44, %cst_14 {dimension_numbers = #tpu.dot_dimension_numbers<[1], [0], [0], [1], [0, 0, 1, 1], [], []>} : vector<16x16xf32>, vector<16x4096xf32>, vector<16x4096xf32> -> vector<16x4096xf32>
    %47 = tpu.iota {dimensions = array<i32: 0>} : vector<8x4096xi32>
    %48 = vector.shape_cast %35 : vector<1x4096xf32> to vector<1x4096xf32>
    %49 = vector.broadcast %48 : vector<1x4096xf32> to vector<8x4096xf32>
    %c3_i32 = arith.constant 3 : i32
    %50 = vector.broadcast %c3_i32 : i32 to vector<8x4096xi32>
    %51 = arith.cmpi slt, %47, %50 : vector<8x4096xi32>
    %52 = vector.shape_cast %16 : vector<1x4096xf32> to vector<1x4096xf32>
    %53 = vector.broadcast %52 : vector<1x4096xf32> to vector<8x4096xf32>
    %54 = arith.select %51, %53, %49 : vector<8x4096xi1>, vector<8x4096xf32>
    %c0_15 = arith.constant 0 : index
    %c0_16 = arith.constant 0 : index
    %55 = vector.load %arg4[%c0_15, %c0_16] : memref<8x6xf32, #tpu.memory_space<vmem>>, vector<8x6xf32>
    %56 = vector.extract_strided_slice %55 {offsets = [0, 0], sizes = [8, 1], strides = [1, 1]} : vector<8x6xf32> to vector<8x1xf32>
    %57 = vector.broadcast %56 : vector<8x1xf32> to vector<8x4096xf32>
    %58 = arith.mulf %54, %57 : vector<8x4096xf32>
    %59 = vector.extract_strided_slice %55 {offsets = [0, 1], sizes = [8, 1], strides = [1, 1]} : vector<8x6xf32> to vector<8x1xf32>
    %60 = vector.broadcast %59 : vector<8x1xf32> to vector<8x4096xf32>
    %61 = arith.addf %58, %60 : vector<8x4096xf32>
    %62 = vector.extract_strided_slice %55 {offsets = [0, 2], sizes = [8, 1], strides = [1, 1]} : vector<8x6xf32> to vector<8x1xf32>
    %63 = vector.broadcast %62 : vector<8x1xf32> to vector<8x4096xf32>
    %64 = arith.mulf %54, %63 : vector<8x4096xf32>
    %65 = vector.extract_strided_slice %55 {offsets = [0, 3], sizes = [8, 1], strides = [1, 1]} : vector<8x6xf32> to vector<8x1xf32>
    %66 = vector.broadcast %65 : vector<8x1xf32> to vector<8x4096xf32>
    %67 = arith.addf %64, %66 : vector<8x4096xf32>
    %68 = arith.mulf %61, %67 : vector<8x4096xf32>
    %69 = vector.extract_strided_slice %55 {offsets = [0, 4], sizes = [8, 1], strides = [1, 1]} : vector<8x6xf32> to vector<8x1xf32>
    %70 = vector.broadcast %69 : vector<8x1xf32> to vector<8x4096xf32>
    %71 = arith.mulf %54, %70 : vector<8x4096xf32>
    %72 = vector.extract_strided_slice %55 {offsets = [0, 5], sizes = [8, 1], strides = [1, 1]} : vector<8x6xf32> to vector<8x1xf32>
    %73 = vector.broadcast %72 : vector<8x1xf32> to vector<8x4096xf32>
    %74 = arith.addf %71, %73 : vector<8x4096xf32>
    %75 = arith.mulf %68, %74 : vector<8x4096xf32>
    %c0_17 = arith.constant 0 : index
    %c0_18 = arith.constant 0 : index
    %76 = vector.load %arg3[%c0_17, %c0_18] : memref<32x8xf32, #tpu.memory_space<vmem>>, vector<32x8xf32>
    %cst_19 = arith.constant dense<0.000000e+00> : vector<32x4096xf32>
    %77 = tpu.matmul %76, %75, %cst_19 {dimension_numbers = #tpu.dot_dimension_numbers<[1], [0], [0], [1], [0, 0, 1, 1], [], []>} : vector<32x8xf32>, vector<8x4096xf32>, vector<32x4096xf32> -> vector<32x4096xf32>
    %78 = vector.extract_strided_slice %77 {offsets = [0, 0], sizes = [16, 4096], strides = [1, 1]} : vector<32x4096xf32> to vector<16x4096xf32>
    %79 = vector.extract_strided_slice %77 {offsets = [16, 0], sizes = [16, 4096], strides = [1, 1]} : vector<32x4096xf32> to vector<16x4096xf32>
    %80 = arith.mulf %78, %79 : vector<16x4096xf32>
    %81 = arith.mulf %80, %46 : vector<16x4096xf32>
    %cst_20 = arith.constant dense<0.000000e+00> : vector<4096xf32>
    %82 = vector.multi_reduction <add>, %81, %cst_20 [0] : vector<16x4096xf32> to vector<4096xf32>
    %83 = vector.shape_cast %82 : vector<4096xf32> to vector<1x4096xf32>
    %c0_21 = arith.constant 0 : index
    %c0_22 = arith.constant 0 : index
    %84 = vector.load %arg5[%c0_21, %c0_22] : memref<1x4096xf32, #tpu.memory_space<vmem>>, vector<1x4096xf32>
    tpu.vector_store %arg5[%c0_21, %c0_22], %83 {strides = array<i32>} : memref<1x4096xf32, #tpu.memory_space<vmem>>, vector<1x4096xf32>,
    return
  }
  func.func @transform_0(%arg0: i32) -> (i32, i32) {
    %c0_i32 = arith.constant 0 : i32
    %c0_i32_0 = arith.constant 0 : i32
    return %c0_i32, %arg0 : i32, i32
  }
  func.func @transform_1(%arg0: i32) -> (i32, i32) {
    %c0_i32 = arith.constant 0 : i32
    %c0_i32_0 = arith.constant 0 : i32
    %c0_i32_1 = arith.constant 0 : i32
    return %c0_i32, %c0_i32_0 : i32, i32
  }
  func.func @transform_2(%arg0: i32) -> (i32, i32) {
    %c0_i32 = arith.constant 0 : i32
    %c0_i32_0 = arith.constant 0 : i32
    %c0_i32_1 = arith.constant 0 : i32
    return %c0_i32, %c0_i32_0 : i32, i32
  }
  func.func @transform_3(%arg0: i32) -> (i32, i32) {
    %c0_i32 = arith.constant 0 : i32
    %c0_i32_0 = arith.constant 0 : i32
    %c0_i32_1 = arith.constant 0 : i32
    return %c0_i32, %c0_i32_0 : i32, i32
  }
  func.func @transform_4(%arg0: i32) -> (i32, i32) {
    %c0_i32 = arith.constant 0 : i32
    %c0_i32_0 = arith.constant 0 : i32
    return %c0_i32, %arg0 : i32, i32
  }
}

</mosaic_0001>

<bundles_post_ra>
// kernel: tpu_custom_call.1
= control target key start
LH: loop header
LB: loop body
LE: loop exit
PB: predicated region body
PF: predicated region fallthrough
CT: control target
= control target key end

     0   :  { %9 = vsyncpa [#allocation3], 0  ;;  %s6797_s0 = inlined_call_operand.hbm [shape: f32[2,4096], index: 0, kind: input, shape index: {}]   ;;  %s6798_s1 = inlined_call_operand.vmem [shape: f32[16,16], index: 1, kind: input, shape index: {}]   ;;  %s6799_s2 = inlined_call_operand.vmem [shape: f32[32,8], index: 2, kind: input, shape index: {}]   ;;  %s6800_s3 = inlined_call_operand.vmem [shape: f32[8,6], index: 3, kind: input, shape index: {}]   ;;  %s6801_s4 = inlined_call_operand.hbm [shape: f32[1,4096], index: 4, kind: output, shape index: {}]  }
   0x1   :  { %10 = vsyncpa [#allocation4], 0  ;;  %s5146_s15 = smov [#allocation2]   ;;  %s5098_s19 = scalar_lea.hbm %s6797_s0, 1024 }
   0x2   :  { %s17_s16 = sshll.u32 %s5146_s15, 4  ;;  %p5099_p0 = scmp.ne.s32.totalorder %s6797_s0, %s5098_s19  ;;  %s18_s16 = int_to_ptr.vmem [resolvable:$true] %s17_s16 }
   0x3   :  { %p5102_p1 = scmp.lt.u32.totalorder %s5098_s19, %s6797_s0 }
   0x5   :  { %p5104_p2 = pnand %p5102_p1, %p5099_p0 }
   0x7   :  { %5107 = shalt.err (!%p5104_p2)
}
   0x8   :  { %s5108_s24 = scalar_lea.vmem %s18_s16, 1024  ;;  %p5113_p4 = scmp.lt.s32.totalorder %s18_s16, %s18_s16 }
   0x9   :  { %p5109_p3 = scmp.ne.s32.totalorder %s18_s16, %s5108_s24  ;;  %p5114_p5 = scmp.lt.s32.totalorder %s5108_s24, %s5108_s24 }
   0xb   :  { %p5115_p6 = por %p5114_p5, %p5113_p4 }
   0xd   :  { %p5116_p7 = pnand %p5115_p6, %p5109_p3 }
   0xf   :  { %5119 = shalt.err (!%p5116_p7)
}
  0x10   :  { %20 = dma.hbm_to_vmem [thread:$0]  %s6797_s0, 1024, %s18_s16, [#allocation3]  }
  0x11   :  { %5142 = dma.done.wait [#allocation3], 1024  }
  0x12   :  { %5143 = vsyncadd [#allocation3], 4294966272  ;;  %v5147_v0 = vmov 1   ;;  %v5148_v1 = vmov 0   ;;  %v6802_v2 = vmov 0.0   ;;  %v134_v3 = vlaneseq  ;;  %v2443_v4 = vld [vmem:[%s6800_s3] sm:$0xff] }
  0x13   :  { %5094 = vset.pattern.permute.xlu1 %v5147_v0  ;;  %5092 = vset.pattern.permute.xlu0 %v5148_v1  ;;  %v30_v5 = vld [vmem:[#allocation2] sm:$0xff]  ;;  %v31_v7 = vld [vmem:[#allocation2 + $0x8] sm:$0xff]  ;;  %v32_v8 = vld [vmem:[#allocation2 + $0x10] sm:$0xff]  ;;  %v5150_v21 = vmov 3   ;;  %v5151_v22 = vmov 2   ;;  %v5152_v44 = vmov 4  }
  0x14   :  { %658 = vmatprep.mubr.f32.mxu0 %v6802_v2  ;;  %735 = vmatprep.mubr.f32.mxu1 %v6802_v2  ;;  %v38_v6 = vmul.f32 4.0, %v30_v5  ;;  %v5199_v9 = vshrl.u32 %v134_v3, 7  ;;  %v39_v10 = vmul.f32 4.0, %v31_v7  ;;  %v40_v11 = vmul.f32 4.0, %v32_v8  ;;  %v33_v12 = vld [vmem:[#allocation2 + $0x18] sm:$0xff]  ;;  %v34_v13 = vld [vmem:[#allocation2 + $0x20] sm:$0xff] }
  0x15   :  { %2482 = vperm.xlu1 %5094, %v2443_v4   ;;  %2446 = vperm.xlu0 %5092, %v2443_v4   ;;  %v35_v14 = vld [vmem:[#allocation2 + $0x28] sm:$0xff]  ;;  %v41_v16 = vmul.f32 4.0, %v33_v12  ;;  %v42_v17 = vmul.f32 4.0, %v34_v13  ;;  %v36_v20 = vld [vmem:[#allocation2 + $0x30] sm:$0xff]  ;;  %v37_v35 = vld [vmem:[#allocation2 + $0x38] sm:$0xff]  ;;  %v5153_v45 = vmov 5  }
  0x16   :  { %6809 = vst [vmem:[#allocation8_spill] sm:$0xff] %v5199_v9  ;;  %v46_v15 = vmax.f32 %v38_v6, 0.0  ;;  %v47_v18 = vmax.f32 %v39_v10, 0.0  ;;  %v48_v19 = vmax.f32 %v40_v11, 0.0  ;;  %v43_v26 = vmul.f32 4.0, %v35_v14 }
  0x17   :  { %v49_v24 = vmax.f32 %v41_v16, 0.0  ;;  %v50_v25 = vmax.f32 %v42_v17, 0.0  ;;  %v5204_v27 = vadd.s32 8, %v5199_v9  ;;  %v5207_v28 = vsub.s32 0, %v5199_v9 }
  0x18   :  { %v5201_v23 = vmin.f32 %v46_v15, 4.0  ;;  %v5209_v29 = vmin.f32 %v47_v18, 4.0  ;;  %v5211_v30 = vmin.f32 %v48_v19, 4.0  ;;  %v44_v34 = vmul.f32 4.0, %v36_v20 }
  0x19   :  { %5095 = vset.pattern.permute.xlu1 %v5150_v21  ;;  %5093 = vset.pattern.permute.xlu0 %v5151_v22  ;;  %v5214_v32 = vmin.f32 %v49_v24, 4.0  ;;  %v5216_v33 = vmin.f32 %v50_v25, 4.0  ;;  %v5219_v36 = vsub.s32 2, %v5199_v9  ;;  %v5222_v37 = vsub.s32 6, %v5199_v9 }
  0x1a   :  { %2554 = vperm.xlu1 %5095, %v2443_v4   ;;  %2518 = vperm.xlu0 %5093, %v2443_v4   ;;  %v62_v31 = vfloor.f32 %v5201_v23  ;;  %v63_v38 = vfloor.f32 %v5209_v29  ;;  %v64_v39 = vfloor.f32 %v5211_v30  ;;  %v5229_v41 = vsub.s32 4, %v5199_v9 }
  0x1b   :  { %v65_v42 = vfloor.f32 %v5214_v32  ;;  %v51_v43 = vmax.f32 %v43_v26, 0.0  ;;  %v66_v48 = vfloor.f32 %v5216_v33  ;;  %v5237_v49 = vmul.f32 4.0, %v37_v35 }
  0x1c   :  { %v5226_v40 = vmin.f32 %v62_v31, 3.0  ;;  %v5232_v46 = vmin.f32 %v63_v38, 3.0  ;;  %v5234_v47 = vmin.f32 %v64_v39, 3.0  ;;  %v52_v53 = vmax.f32 %v44_v34, 0.0 }
  0x1d   :  { %v5242_v52 = vmin.f32 %v65_v42, 3.0  ;;  %v5253_v61 = vmin.f32 %v51_v43, 4.0  ;;  %v5255_v0 = vmin.f32 %v66_v48, 3.0  ;;  %v53_v1 = vmax.f32 %v5237_v49, 0.0 }
  0x1e   :  { %5096 = vset.pattern.permute.xlu1 %v5152_v44  ;;  %5097 = vset.pattern.permute.xlu0 %v5153_v45  ;;  %v78_v50 = vsub.f32 %v5201_v23, %v5226_v40  ;;  %v5065_v51 = vtrunc.f32 %v5226_v40  ;;  %v79_v54 = vsub.f32 %v5209_v29, %v5232_v46  ;;  %v5067_v55 = vtrunc.f32 %v5232_v46 }
  0x1f   :  { %2622 = vperm.xlu1 %5096, %v2443_v4   ;;  %2658 = vperm.xlu0 %5097, %v2443_v4   ;;  %v80_v56 = vsub.f32 %v5211_v30, %v5234_v47  ;;  %v5069_v57 = vtrunc.f32 %v5234_v47  ;;  %v81_v59 = vsub.f32 %v5214_v32, %v5242_v52  ;;  %v5071_v60 = vtrunc.f32 %v5242_v52 }
  0x20   :  { %v5066_v58 = vcvt.f32.s32 %v5065_v51  ;;  %v5068_v62 = vcvt.f32.s32 %v5067_v55  ;;  %v5260_v6 = vmin.f32 %v52_v53, 4.0  ;;  %v82_v14 = vsub.f32 %v5216_v33, %v5255_v0  ;;  %v5311_v55 = vld [vmem:[%s6798_s1] sm:$0xff] }
  0x21   :  { %v5070_v63 = vcvt.f32.s32 %v5069_v57  ;;  %v5258_v5 = vcvt.f32.s32 %v5071_v60  ;;  %v67_v15 = vfloor.f32 %v5253_v61  ;;  %v5073_v19 = vtrunc.f32 %v5255_v0 }
  0x22   :  { %v102_v3 = vmul.u32 4, %v5066_v58  ;;  %v4769_v4 = vrot.slane %v5066_v58, 9  ;;  %v103_v7 = vmul.u32 4, %v5068_v62  ;;  %v4770_v8 = vrot.slane %v5068_v62, 9 }
  0x23   :  { %v104_v10 = vmul.u32 4, %v5070_v63  ;;  %v4771_v11 = vrot.slane %v5070_v63, 9  ;;  %v105_v13 = vmul.u32 4, %v5258_v5  ;;  %v4772_v18 = vrot.slane %v5258_v5, 9 }
  0x24   :  { %v126_v12 = vadd.s32 %v4769_v4, %v102_v3  ;;  %v127_v16 = vadd.s32 %v4770_v8, %v103_v7  ;;  %vm587_vm0 = vcmask 130048   ;;  %v5154_v51 = vmov 1.0|1.0  }
  0x25   :  { %v128_v17 = vadd.s32 %v4771_v11, %v104_v10  ;;  %v5296_v53 = vmin.f32 %v67_v15, 3.0  ;;  %v129_v63 = vadd.s32 %v4772_v18, %v105_v13  ;;  %v5074_v3 = vcvt.f32.s32 %v5073_v19 }
  0x26   :  { %v144_v20 = vrot.slane %v126_v12, %v5219_v36  ;;  %v152_v21 = vrot.slane %v126_v12, %v5222_v37  ;;  %v140_v22 = vrot.slane %v126_v12, %v5207_v28  ;;  %v148_v24 = vrot.slane %v126_v12, %v5229_v41 }
  0x27   :  { %v160_v25 = vrot.slane %v127_v16, %v5219_v36  ;;  %v168_v26 = vrot.slane %v127_v16, %v5222_v37  ;;  %v156_v31 = vrot.slane %v127_v16, %v5207_v28  ;;  %v164_v34 = vrot.slane %v127_v16, %v5229_v41  ;;  %v5350_v16 = vld [vmem:[%s6798_s1 + $0x8] sm:$0xff] }
  0x28   :  { %v272_v35 = vrot.slane %v144_v20, %v5207_v28  ;;  %v280_v38 = vrot.slane %v152_v21, %v5207_v28  ;;  %v268_v39 = vrot.slane %v140_v22, %v5207_v28  ;;  %v276_v42 = vrot.slane %v148_v24, %v5207_v28 }
  0x29   :  { %v288_v43 = vrot.slane %v160_v25, %v5207_v28  ;;  %v296_v44 = vrot.slane %v168_v26, %v5207_v28  ;;  %v284_v45 = vrot.slane %v156_v31, %v5207_v28  ;;  %v292_v48 = vrot.slane %v164_v34, %v5207_v28 }
  0x2a   :  { %vm394_vm1 = vcmp.eq.s32.totalorder %v5199_v9, %v272_v35  ;;  %vm426_vm2 = vcmp.eq.s32.totalorder %v5204_v27, %v272_v35  ;;  %vm396_vm3 = vcmp.eq.s32.totalorder %v5199_v9, %v280_v38  ;;  %vm428_vm4 = vcmp.eq.s32.totalorder %v5204_v27, %v280_v38 }
  0x2b   :  { %vm5001_vm5 = vmpackc.low %vm426_vm2, %vm394_vm1  ;;  %vm393_vm6 = vcmp.eq.s32.totalorder %v5199_v9, %v268_v39  ;;  %vm425_vm7 = vcmp.eq.s32.totalorder %v5204_v27, %v268_v39  ;;  %vm395_vm8 = vcmp.eq.s32.totalorder %v5199_v9, %v276_v42  ;;  %vm427_vm9 = vcmp.eq.s32.totalorder %v5204_v27, %v276_v42 }
  0x2c   :  { %5002 = vmatprep.subr.msk.bf16.mxu0 %vm5001_vm5, %v5154_v51  ;;  %vm5005_vm10 = vmpackc.low %vm428_vm4, %vm396_vm3  ;;  %vm398_vm11 = vcmp.eq.s32.totalorder %v5199_v9, %v288_v43  ;;  %vm430_vm12 = vcmp.eq.s32.totalorder %v5204_v27, %v288_v43  ;;  %vm400_vm13 = vcmp.eq.s32.totalorder %v5199_v9, %v296_v44  ;;  %vm432_vm15 = vcmp.eq.s32.totalorder %v5204_v27, %v296_v44 }
  0x2d   :  { %5006 = vmatprep.subr.msk.bf16.mxu1 %vm5005_vm10, %v5154_v51  ;;  %vm5003_vm14 = vmpackc.low %vm425_vm7, %vm393_vm6  ;;  %vm397_vm1 = vcmp.eq.s32.totalorder %v5199_v9, %v284_v45  ;;  %vm429_vm2 = vcmp.eq.s32.totalorder %v5204_v27, %v284_v45  ;;  %vm399_vm5 = vcmp.eq.s32.totalorder %v5199_v9, %v292_v48  ;;  %v176_v57 = vrot.slane %v128_v17, %v5219_v36 }
  0x2e   :  { %5004 = vmatpush1.bf16.msk.msra.mxu0 %vm5003_vm14, %v5154_v51  ;;  %vm5007_vm3 = vmpackc.low %vm427_vm9, %vm395_vm8  ;;  %v184_v58 = vrot.slane %v128_v17, %v5222_v37  ;;  %v172_v60 = vrot.slane %v128_v17, %v5207_v28  ;;  %v180_v62 = vrot.slane %v128_v17, %v5229_v41  ;;  %vm431_vm6 = vcmp.eq.s32.totalorder %v5204_v27, %v292_v48 }
  0x2f   :  { %5008 = vmatpush1.bf16.msk.msra.mxu1 %vm5007_vm3, %v5154_v51  ;;  %vm5009_vm4 = vmpackc.low %vm430_vm12, %vm398_vm11  ;;  %v83_v4 = vsub.f32 %v5253_v61, %v5296_v53  ;;  %v304_v5 = vrot.slane %v176_v57, %v5207_v28  ;;  %v192_v11 = vrot.slane %v129_v63, %v5219_v36  ;;  %v200_v12 = vrot.slane %v129_v63, %v5222_v37 }
  0x30   :  { %5010 = vmatprep.subr.msk.bf16.mxu0 %vm5009_vm4, %v5154_v51  ;;  %vm5013_vm7 = vmpackc.low %vm432_vm15, %vm400_vm13  ;;  %v312_v7 = vrot.slane %v184_v58, %v5207_v28  ;;  %v300_v8 = vrot.slane %v172_v60, %v5207_v28  ;;  %v308_v10 = vrot.slane %v180_v62, %v5207_v28  ;;  %v106_v13 = vmul.u32 4, %v5074_v3 }
  0x31   :  { %4845 = vmatmul.mubr.msk.f32.vlgmr.msra.gmra.mrb[0].mxu0 %vm587_vm0, %v5311_v55  ;;  %5014 = vmatprep.subr.msk.bf16.mxu1 %vm5013_vm7, %v5154_v51  ;;  %vm5011_vm8 = vmpackc.low %vm429_vm2, %vm397_vm1  ;;  %v68_v15 = vfloor.f32 %v5260_v6  ;;  %vm402_vm10 = vcmp.eq.s32.totalorder %v5199_v9, %v304_v5  ;;  %vm434_vm11 = vcmp.eq.s32.totalorder %v5204_v27, %v304_v5  ;;  %v4773_v17 = vrot.slane %v5074_v3, 9 }
  0x32   :  { %4851 = vmatmul.mubr.msk.f32.vlgmr.msra.gmra.mrb[0].mxu1 %vm587_vm0, %v5311_v55  ;;  %664 = vmatprep.mubr.f32.mxu0 %v6802_v2  ;;  %vm5015_vm9 = vmpackc.low %vm431_vm6, %vm399_vm5  ;;  %vm404_vm12 = vcmp.eq.s32.totalorder %v5199_v9, %v312_v7  ;;  %vm436_vm14 = vcmp.eq.s32.totalorder %v5204_v27, %v312_v7  ;;  %vm401_vm15 = vcmp.eq.s32.totalorder %v5199_v9, %v300_v8  ;;  %v5366_v19 = vmin.f32 %v53_v1, 4.0 }
  0x33   :  { %741 = vmatprep.mubr.f32.mxu1 %v6802_v2  ;;  %5012 = vmatpush1.bf16.msk.msra.mxu0 %vm5011_vm8, %v5154_v51  ;;  %vm5017_vm13 = vmpackc.low %vm434_vm11, %vm402_vm10  ;;  %v188_v18 = vrot.slane %v129_v63, %v5207_v28  ;;  %vm433_vm2 = vcmp.eq.s32.totalorder %v5204_v27, %v300_v8  ;;  %vm403_vm5 = vcmp.eq.s32.totalorder %v5199_v9, %v308_v10  ;;  %v5075_v21 = vtrunc.f32 %v5296_v53 }
  0x34   :  { %5016 = vmatpush1.bf16.msk.msra.mxu1 %vm5015_vm9, %v5154_v51  ;;  %5018 = vmatprep.subr.msk.bf16.mxu0 %vm5017_vm13, %v5154_v51  ;;  %vm5021_vm1 = vmpackc.low %vm436_vm14, %vm404_vm12  ;;  %v320_v20 = vrot.slane %v192_v11, %v5207_v28  ;;  %vm435_vm3 = vcmp.eq.s32.totalorder %v5204_v27, %v308_v10  ;;  %v328_v49 = vrot.slane %v200_v12, %v5207_v28  ;;  %v5380_v22 = vmin.f32 %v68_v15, 3.0 }
  0x35   :  { %4846 = vmatmul.mubr.msk.f32.gmra.mrb[2].mxu0 %vm587_vm0, %v5350_v16  ;;  %5022 = vmatprep.subr.msk.bf16.mxu1 %vm5021_vm1, %v5154_v51  ;;  %v196_v1 = vrot.slane %v129_v63, %v5229_v41  ;;  %v130_v24 = vadd.s32 %v4773_v17, %v106_v13  ;;  %v5076_v25 = vcvt.f32.s32 %v5075_v21  ;;  %vm5392_vm7 = vmpackc.low %vm433_vm2, %vm401_vm15  ;;  %v316_v31 = vrot.slane %v188_v18, %v5207_v28 }
  0x36   :  { %4852 = vmatmul.mubr.msk.f32.gmra.mrb[2].mxu1 %vm587_vm0, %v5350_v16  ;;  %812 = vmatprep.mubr.f32.mxu0 %v6802_v2  ;;  %vm406_vm4 = vcmp.eq.s32.totalorder %v5199_v9, %v320_v20  ;;  %vm438_vm6 = vcmp.eq.s32.totalorder %v5204_v27, %v320_v20  ;;  %vm408_vm8 = vcmp.eq.s32.totalorder %v5199_v9, %v328_v49  ;;  %vm5403_vm10 = vmpackc.low %vm435_vm3, %vm403_vm5  ;;  %v69_v39 = vfloor.f32 %v5366_v19 }
  0x37   :  { %889 = vmatprep.mubr.f32.mxu1 %v6802_v2  ;;  %vm440_vm9 = vcmp.eq.s32.totalorder %v5204_v27, %v328_v49  ;;  %v208_v35 = vrot.slane %v130_v24, %v5219_v36  ;;  %v216_v38 = vrot.slane %v130_v24, %v5222_v37  ;;  %vm5412_vm11 = vmpackc.low %vm438_vm6, %vm406_vm4  ;;  %v324_v43 = vrot.slane %v196_v1, %v5207_v28 }
  0x38   :  { %v107_v44 = vmul.u32 4, %v5076_v25  ;;  %v4774_v45 = vrot.slane %v5076_v25, 9  ;;  %v84_v48 = vsub.f32 %v5260_v6, %v5380_v22  ;;  %vm5029_vm12 = vmpackc.low %vm440_vm9, %vm408_vm8  ;;  %v204_v58 = vrot.slane %v130_v24, %v5207_v28 }
  0x39   :  { %4857 = vmatmul.mubr.msk.f32.vlgmr.msra.gmra.mrb[4].mxu0 %vm587_vm0, %v5311_v55  ;;  %v336_v57 = vrot.slane %v208_v35, %v5207_v28  ;;  %v5077_v60 = vtrunc.f32 %v5380_v22  ;;  %vm405_vm13 = vcmp.eq.s32.totalorder %v5199_v9, %v316_v31  ;;  %v344_v62 = vrot.slane %v216_v38, %v5207_v28 }
  0x3a   :  { %4863 = vmatmul.mubr.msk.f32.vlgmr.msra.gmra.mrb[4].mxu1 %vm587_vm0, %v5311_v55  ;;  %818 = vmatprep.mubr.f32.mxu0 %v6802_v2  ;;  %vm437_vm14 = vcmp.eq.s32.totalorder %v5204_v27, %v316_v31  ;;  %v212_v63 = vrot.slane %v130_v24, %v5229_v41  ;;  %v131_v3 = vadd.s32 %v4774_v45, %v107_v44  ;;  %v5446_v7 = vmin.f32 %v69_v39, 3.0 }
  0x3b   :  { %895 = vmatprep.mubr.f32.mxu1 %v6802_v2  ;;  %5020 = vmatpush1.bf16.msk.msra.mxu0 %vm5392_vm7, %v5154_v51  ;;  %v5078_v5 = vcvt.f32.s32 %v5077_v60  ;;  %vm407_vm15 = vcmp.eq.s32.totalorder %v5199_v9, %v324_v43  ;;  %vm439_vm1 = vcmp.eq.s32.totalorder %v5204_v27, %v324_v43  ;;  %vm410_vm2 = vcmp.eq.s32.totalorder %v5199_v9, %v336_v57  ;;  %vm5459_vm3 = vmpackc.low %vm437_vm14, %vm405_vm13 }
  0x3c   :  { %5024 = vmatpush1.bf16.msk.msra.mxu1 %vm5403_vm10, %v5154_v51  ;;  %5026 = vmatprep.subr.msk.bf16.mxu0 %vm5412_vm11, %v5154_v51  ;;  %vm442_vm5 = vcmp.eq.s32.totalorder %v5204_v27, %v336_v57  ;;  %v332_v8 = vrot.slane %v204_v58, %v5207_v28  ;;  %vm412_vm4 = vcmp.eq.s32.totalorder %v5199_v9, %v344_v62  ;;  %vm5469_vm7 = vmpackc.low %vm439_vm1, %vm407_vm15  ;;  %v5079_v21 = vtrunc.f32 %v5446_v7 }
  0x3d   :  { %4858 = vmatmul.mubr.msk.f32.gmra.mrb[6].mxu0 %vm587_vm0, %v5350_v16  ;;  %5030 = vmatprep.subr.msk.bf16.mxu1 %vm5029_vm12, %v5154_v51  ;;  %v108_v10 = vmul.u32 4, %v5078_v5  ;;  %vm444_vm6 = vcmp.eq.s32.totalorder %v5204_v27, %v344_v62  ;;  %v224_v12 = vrot.slane %v131_v3, %v5219_v36  ;;  %v232_v13 = vrot.slane %v131_v3, %v5222_v37  ;;  %vm5033_vm8 = vmpackc.low %vm442_vm5, %vm410_vm2 }
  0x3e   :  { %4864 = vmatmul.mubr.msk.f32.gmra.mrb[6].mxu1 %vm587_vm0, %v5350_v16  ;;  %966 = vmatprep.mubr.f32.mxu0 %v6802_v2  ;;  %v340_v17 = vrot.slane %v212_v63, %v5207_v28  ;;  %v4775_v18 = vrot.slane %v5078_v5, 9  ;;  %v85_v20 = vsub.f32 %v5366_v19, %v5446_v7  ;;  %vm5037_vm9 = vmpackc.low %vm444_vm6, %vm412_vm4  ;;  %v5080_v24 = vcvt.f32.s32 %v5079_v21 }
  0x3f   :  { %1043 = vmatprep.mubr.f32.mxu1 %v6802_v2  ;;  %v352_v49 = vrot.slane %v224_v12, %v5207_v28  ;;  %vm409_vm10 = vcmp.eq.s32.totalorder %v5199_v9, %v332_v8  ;;  %v360_v25 = vrot.slane %v232_v13, %v5207_v28  ;;  %vm441_vm11 = vcmp.eq.s32.totalorder %v5204_v27, %v332_v8 }
  0x40   :  { %v5487_v1 = vadd.s32 %v4775_v18, %v108_v10  ;;  %vm411_vm12 = vcmp.eq.s32.totalorder %v5199_v9, %v340_v17  ;;  %v220_v26 = vrot.slane %v131_v3, %v5207_v28  ;;  %vm443_vm13 = vcmp.eq.s32.totalorder %v5204_v27, %v340_v17  ;;  %vm5035_vm1 = vmpackc.low %vm441_vm11, %vm409_vm10 }
  0x41   :  { %4869 = vmatmul.mubr.msk.f32.vlgmr.msra.gmra.mrb[8].mxu0 %vm587_vm0, %v5311_v55  ;;  %vm414_vm14 = vcmp.eq.s32.totalorder %v5199_v9, %v352_v49  ;;  %v228_v31 = vrot.slane %v131_v3, %v5229_v41  ;;  %vm446_vm15 = vcmp.eq.s32.totalorder %v5204_v27, %v352_v49  ;;  %v109_v35 = vmul.u32 4, %v5080_v24 }
  0x42   :  { %4875 = vmatmul.mubr.msk.f32.vlgmr.msra.gmra.mrb[8].mxu1 %vm587_vm0, %v5311_v55  ;;  %972 = vmatprep.mubr.f32.mxu0 %v6802_v2  ;;  %v240_v34 = vrot.slane %v5487_v1, %v5219_v36  ;;  %v4776_v38 = vrot.slane %v5080_v24, 9  ;;  %vm416_vm2 = vcmp.eq.s32.totalorder %v5199_v9, %v360_v25  ;;  %vm448_vm5 = vcmp.eq.s32.totalorder %v5204_v27, %v360_v25  ;;  %vm5041_vm4 = vmpackc.low %vm446_vm15, %vm414_vm14 }
  0x43   :  { %1049 = vmatprep.mubr.f32.mxu1 %v6802_v2  ;;  %5028 = vmatpush1.bf16.msk.msra.mxu0 %vm5459_vm3, %v5154_v51  ;;  %v248_v39 = vrot.slane %v5487_v1, %v5222_v37  ;;  %vm5039_vm3 = vmpackc.low %vm443_vm13, %vm411_vm12  ;;  %v348_v42 = vrot.slane %v220_v26, %v5207_v28  ;;  %v356_v43 = vrot.slane %v228_v31, %v5207_v28  ;;  %v5621_v17 = vmul.f32 2.0, %v78_v50 }
  0x44   :  { %5032 = vmatpush1.bf16.msk.msra.mxu1 %vm5469_vm7, %v5154_v51  ;;  %5034 = vmatprep.subr.msk.bf16.mxu0 %vm5033_vm8, %v5154_v51  ;;  %vm5045_vm6 = vmpackc.low %vm448_vm5, %vm416_vm2  ;;  %v368_v44 = vrot.slane %v240_v34, %v5207_v28  ;;  %v133_v45 = vadd.s32 %v4776_v38, %v109_v35  ;;  %v236_v58 = vrot.slane %v5487_v1, %v5207_v28  ;;  %v5630_v18 = vsub.s32 7, %v5199_v9 }
  0x45   :  { %4870 = vmatmul.mubr.msk.f32.gmra.mrb[10].mxu0 %vm587_vm0, %v5350_v16  ;;  %5038 = vmatprep.subr.msk.bf16.mxu1 %vm5037_vm9, %v5154_v51  ;;  %v376_v57 = vrot.slane %v248_v39, %v5207_v28  ;;  %vm413_vm7 = vcmp.eq.s32.totalorder %v5199_v9, %v348_v42  ;;  %vm445_vm8 = vcmp.eq.s32.totalorder %v5204_v27, %v348_v42  ;;  %v5645_v50 = vmul.f32 2.0, %v83_v4 }
  0x46   :  { %4876 = vmatmul.mubr.msk.f32.gmra.mrb[10].mxu1 %vm587_vm0, %v5350_v16  ;;  %1120 = vmatprep.mubr.f32.mxu0 %v6802_v2  ;;  %vm415_vm9 = vcmp.eq.s32.totalorder %v5199_v9, %v356_v43  ;;  %vm447_vm10 = vcmp.eq.s32.totalorder %v5204_v27, %v356_v43  ;;  %v244_v60 = vrot.slane %v5487_v1, %v5229_v41  ;;  %vm5043_vm13 = vmpackc.low %vm445_vm8, %vm413_vm7  ;;  %v5657_v1 = vsub.s32 5, %v5199_v9 }
  0x47   :  { %1197 = vmatprep.mubr.f32.mxu1 %v6802_v2  ;;  %vm418_vm11 = vcmp.eq.s32.totalorder %v5199_v9, %v368_v44  ;;  %vm450_vm12 = vcmp.eq.s32.totalorder %v5204_v27, %v368_v44  ;;  %v256_v62 = vrot.slane %v133_v45, %v5219_v36  ;;  %vm420_vm14 = vcmp.eq.s32.totalorder %v5199_v9, %v376_v57 }
  0x48   :  { %vm452_vm15 = vcmp.eq.s32.totalorder %v5204_v27, %v376_v57  ;;  %v264_v63 = vrot.slane %v133_v45, %v5222_v37  ;;  %v364_v3 = vrot.slane %v236_v58, %v5207_v28  ;;  %vm5049_vm2 = vmpackc.low %vm450_vm12, %vm418_vm11  ;;  %v372_v5 = vrot.slane %v244_v60, %v5207_v28 }
  0x49   :  { %4881 = vmatmul.mubr.msk.f32.vlgmr.msra.gmra.mrb[12].mxu0 %vm587_vm0, %v5311_v55  ;;  %vm5053_vm5 = vmpackc.low %vm452_vm15, %vm420_vm14  ;;  %v384_v8 = vrot.slane %v256_v62, %v5207_v28  ;;  %v252_v11 = vrot.slane %v133_v45, %v5207_v28  ;;  %v260_v12 = vrot.slane %v133_v45, %v5229_v41  ;;  %v2130_v40 = vrot.slane %v5621_v17, %v5219_v36 }
  0x4a   :  { %4887 = vmatmul.mubr.msk.f32.vlgmr.msra.gmra.mrb[12].mxu1 %vm587_vm0, %v5311_v55  ;;  %1126 = vmatprep.mubr.f32.mxu0 %v6802_v2  ;;  %v392_v10 = vrot.slane %v264_v63, %v5207_v28  ;;  %vm451_vm7 = vcmp.eq.s32.totalorder %v5204_v27, %v372_v5  ;;  %v1849_v21 = vrot.slane %v5621_v17, %v5630_v18  ;;  %v5666_v61 = vmul.f32 2.0, %v79_v54 }
  0x4b   :  { %1203 = vmatprep.mubr.f32.mxu1 %v6802_v2  ;;  %5036 = vmatpush1.bf16.msk.msra.mxu0 %vm5035_vm1, %v5154_v51  ;;  %vm5047_vm1 = vmpackc.low %vm447_vm10, %vm415_vm9  ;;  %vm422_vm8 = vcmp.eq.s32.totalorder %v5199_v9, %v384_v8  ;;  %vm454_vm9 = vcmp.eq.s32.totalorder %v5204_v27, %v384_v8  ;;  %v380_v13 = vrot.slane %v252_v11, %v5207_v28  ;;  %v92_v53 = vmul.f32 2.0, %v84_v48 }
  0x4c   :  { %5040 = vmatpush1.bf16.msk.msra.mxu1 %vm5039_vm3, %v5154_v51  ;;  %5042 = vmatprep.subr.msk.bf16.mxu0 %vm5041_vm4, %v5154_v51  ;;  %vm417_vm3 = vcmp.eq.s32.totalorder %v5199_v9, %v364_v3  ;;  %vm449_vm4 = vcmp.eq.s32.totalorder %v5204_v27, %v364_v3  ;;  %vm424_vm11 = vcmp.eq.s32.totalorder %v5199_v9, %v392_v10  ;;  %vm5057_vm14 = vmpackc.low %vm454_vm9, %vm422_vm8  ;;  %v93_v26 = vmul.f32 2.0, %v85_v20 }
  0x4d   :  { %4882 = vmatmul.mubr.msk.f32.gmra.mrb[14].mxu0 %vm587_vm0, %v5350_v16  ;;  %5046 = vmatprep.subr.msk.bf16.mxu1 %vm5045_vm6, %v5154_v51  ;;  %vm419_vm6 = vcmp.eq.s32.totalorder %v5199_v9, %v372_v5  ;;  %vm5051_vm10 = vmpackc.low %vm449_vm4, %vm417_vm3  ;;  %vm456_vm12 = vcmp.eq.s32.totalorder %v5204_v27, %v392_v10  ;;  %v388_v15 = vrot.slane %v260_v12, %v5207_v28 }
  0x4e   :  { %4888 = vmatmul.mubr.msk.f32.gmra.mrb[14].mxu1 %vm587_vm0, %v5350_v16  ;;  %1274 = vmatprep.mubr.f32.mxu0 %v6802_v2  ;;  %vm5061_vm15 = vmpackc.low %vm456_vm12, %vm424_vm11  ;;  %v2138_v49 = vrot.slane %v5621_v17, %v5222_v37  ;;  %v2206_v46 = vrot.slane %v5645_v50, %v5207_v28  ;;  %v2126_v6 = vrot.slane %v5621_v17, %v5207_v28 }
  0x4f   :  { %1351 = vmatprep.mubr.f32.mxu1 %v6802_v2  ;;  %vm455_vm3 = vcmp.eq.s32.totalorder %v5204_v27, %v388_v15  ;;  %v1845_v22 = vrot.slane %v5621_v17, %v5657_v1  ;;  %v1925_v48 = vrot.slane %v5645_v50, %v5657_v1  ;;  %v2134_v31 = vrot.slane %v5621_v17, %v5229_v41 }
  0x50   :  { %v5682_v25 = vrot.slane %v2138_v49, %v5207_v28  ;;  %v2366_v35 = vrot.slane %v2206_v46, %v5207_v28  ;;  %v2214_v7 = vrot.slane %v5645_v50, %v5229_v41  ;;  %v2146_v20 = vrot.slane %v5666_v61, %v5219_v36 }
  0x51   :  { %4893 = vmatmul.mubr.msk.f32.vlgmr.msra.gmra.mrb[16].mxu0 %vm587_vm0, %v5311_v55  ;;  %v2226_v42 = vrot.slane %v92_v53, %v5219_v36  ;;  %v1945_v43 = vrot.slane %v92_v53, %v5630_v18  ;;  %v2234_v57 = vrot.slane %v92_v53, %v5222_v37  ;;  %v2222_v63 = vrot.slane %v92_v53, %v5207_v28 }
  0x52   :  { %4899 = vmatmul.mubr.msk.f32.vlgmr.msra.gmra.mrb[16].mxu1 %vm587_vm0, %v5311_v55  ;;  %1280 = vmatprep.mubr.f32.mxu0 %v6802_v2  ;;  %v2374_v44 = vrot.slane %v2214_v7, %v5207_v28  ;;  %v1941_v3 = vrot.slane %v92_v53, %v5657_v1  ;;  %v2230_v11 = vrot.slane %v92_v53, %v5229_v41 }
  0x53   :  { %1357 = vmatprep.mubr.f32.mxu1 %v6802_v2  ;;  %5044 = vmatpush1.bf16.msk.msra.mxu0 %vm5043_vm13, %v5154_v51  ;;  %vm5055_vm13 = vmpackc.low %vm451_vm7, %vm419_vm6  ;;  %vm2122_vm7 = vcmp.lt.s32.totalorder %v5199_v9, 3  ;;  %v2386_v60 = vrot.slane %v2226_v42, %v5207_v28  ;;  %v2394_v8 = vrot.slane %v2234_v57, %v5207_v28  ;;  %v1961_v49 = vrot.slane %v93_v26, %v5630_v18 }
  0x54   :  { %5048 = vmatpush1.bf16.msk.msra.mxu1 %vm5047_vm1, %v5154_v51  ;;  %5050 = vmatprep.subr.msk.bf16.mxu0 %vm5049_vm2, %v5154_v51  ;;  %vm421_vm1 = vcmp.eq.s32.totalorder %v5199_v9, %v380_v13  ;;  %vm453_vm2 = vcmp.eq.s32.totalorder %v5204_v27, %v380_v13  ;;  %v5626_v27 = vsub.s32 3, %v5199_v9  ;;  %v2382_v13 = vrot.slane %v2222_v63, %v5207_v28 }
  0x55   :  { %4894 = vmatmul.mubr.msk.f32.gmra.mrb[18].mxu0 %vm587_vm0, %v5350_v16  ;;  %5054 = vmatprep.subr.msk.bf16.mxu1 %vm5053_vm5, %v5154_v51  ;;  %vm423_vm5 = vcmp.eq.s32.totalorder %v5199_v9, %v388_v15  ;;  %vm5059_vm4 = vmpackc.low %vm453_vm2, %vm421_vm1  ;;  %v2250_v46 = vrot.slane %v93_v26, %v5222_v37  ;;  %v2238_v7 = vrot.slane %v93_v26, %v5207_v28 }
  0x56   :  { %4900 = vmatmul.mubr.msk.f32.gmra.mrb[18].mxu1 %vm587_vm0, %v5350_v16  ;;  %1428 = vmatprep.mubr.f32.mxu0 %v6802_v2  ;;  %vm5063_vm6 = vmpackc.low %vm455_vm3, %vm423_vm5  ;;  %v1841_v23 = vrot.slane %v5621_v17, %v5626_v27  ;;  %v1857_v38 = vrot.slane %v5666_v61, %v5626_v27  ;;  %v2286_v57 = vrot.slane %v2126_v6, %v5207_v28 }
  0x57   :  { %1505 = vmatprep.mubr.f32.mxu1 %v6802_v2  ;;  %v1865_v6 = vrot.slane %v5666_v61, %v5630_v18 }
  0x59   :  { %4905 = vmatmul.mubr.msk.f32.vlgmr.msra.gmra.mrb[20].mxu0 %vm587_vm0, %v5311_v55 }
  0x5a   :  { %4911 = vmatmul.mubr.msk.f32.vlgmr.msra.gmra.mrb[20].mxu1 %vm587_vm0, %v5311_v55  ;;  %1434 = vmatprep.mubr.f32.mxu0 %v6802_v2 }
  0x5b   :  { %1511 = vmatprep.mubr.f32.mxu1 %v6802_v2  ;;  %5052 = vmatpush1.bf16.msk.msra.mxu0 %vm5051_vm10, %v5154_v51 }
  0x5c   :  { %5056 = vmatpush1.bf16.msk.msra.mxu1 %vm5055_vm13, %v5154_v51  ;;  %5058 = vmatprep.subr.msk.bf16.mxu0 %vm5057_vm14, %v5154_v51 }
  0x5d   :  { %4906 = vmatmul.mubr.msk.f32.gmra.mrb[22].mxu0 %vm587_vm0, %v5350_v16  ;;  %5062 = vmatprep.subr.msk.bf16.mxu1 %vm5061_vm15, %v5154_v51 }
  0x5e   :  { %4912 = vmatmul.mubr.msk.f32.gmra.mrb[22].mxu1 %vm587_vm0, %v5350_v16  ;;  %1582 = vmatprep.mubr.f32.mxu0 %v6802_v2 }
  0x5f   :  { %1659 = vmatprep.mubr.f32.mxu1 %v6802_v2 }
  0x61   :  { %4917 = vmatmul.mubr.msk.f32.vlgmr.msra.gmra.mrb[24].mxu0 %vm587_vm0, %v5311_v55 }
  0x62   :  { %4923 = vmatmul.mubr.msk.f32.vlgmr.msra.gmra.mrb[24].mxu1 %vm587_vm0, %v5311_v55  ;;  %1588 = vmatprep.mubr.f32.mxu0 %v6802_v2 }
  0x63   :  { %1665 = vmatprep.mubr.f32.mxu1 %v6802_v2  ;;  %5060 = vmatpush1.bf16.msk.msra.mxu0 %vm5059_vm4, %v5154_v51 }
  0x64   :  { %5064 = vmatpush1.bf16.msk.msra.mxu1 %vm5063_vm6, %v5154_v51  ;;  %v5648_v51 = vsub.s32 1, %v5199_v9 }
  0x65   :  { %4918 = vmatmul.mubr.msk.f32.gmra.mrb[26].mxu0 %vm587_vm0, %v5350_v16 }
  0x66   :  { %4924 = vmatmul.mubr.msk.f32.gmra.mrb[26].mxu1 %vm587_vm0, %v5350_v16  ;;  %1736 = vmatprep.mubr.f32.mxu0 %v6802_v2  ;;  %v5673_v4 = vrot.slane %v1841_v23, %v5648_v51  ;;  %v5679_v24 = vrot.slane %v1849_v21, %v5648_v51  ;;  %v1917_v29 = vrot.slane %v5645_v50, %v5648_v51 }
  0x67   :  { %1813 = vmatprep.mubr.f32.mxu1 %v6802_v2  ;;  %v1837_v54 = vrot.slane %v5621_v17, %v5648_v51  ;;  %v2085_v19 = vrot.slane %v1925_v48, %v5648_v51  ;;  %v1933_v58 = vrot.slane %v92_v53, %v5648_v51  ;;  %v2105_v62 = vrot.slane %v1945_v43, %v5648_v51 }
  0x68   :  { %v2077_v34 = vrot.slane %v1917_v29, %v5648_v51  ;;  %v2101_v15 = vrot.slane %v1941_v3, %v5648_v51  ;;  %v1953_v17 = vrot.slane %v93_v26, %v5626_v27  ;;  %v2242_v21 = vrot.slane %v93_v26, %v5219_v36 }
  0x69   :  { %4929 = vmatmul.mubr.msk.f32.vlgmr.msra.gmra.mrb[28].mxu0 %vm587_vm0, %v5311_v55  ;;  %v5733_v5 = vsel %vm2122_vm7, %v2374_v44, %v2085_v19  ;;  %v2093_v10 = vrot.slane %v1933_v58, %v5648_v51  ;;  %v5747_v23 = vsel %vm2122_vm7, %v2394_v8, %v2105_v62  ;;  %v1949_v48 = vrot.slane %v93_v26, %v5648_v51 }
  0x6a   :  { %4935 = vmatmul.mubr.msk.f32.vlgmr.msra.gmra.mrb[28].mxu1 %vm587_vm0, %v5311_v55  ;;  %1742 = vmatprep.mubr.f32.mxu0 %v6802_v2  ;;  %v5676_v55 = vrot.slane %v2130_v40, %v5207_v28  ;;  %v5719_v39 = vsel %vm2122_vm7, %v2366_v35, %v2077_v34  ;;  %v2390_v40 = vrot.slane %v2230_v11, %v5207_v28 }
  0x6b   :  { %1819 = vmatprep.mubr.f32.mxu1 %v6802_v2  ;;  %v2113_v29 = vrot.slane %v1953_v17, %v5648_v51  ;;  %v2402_v35 = vrot.slane %v2242_v21, %v5207_v28  ;;  %v2121_v19 = vrot.slane %v1961_v49, %v5648_v51  ;;  %v2109_v42 = vrot.slane %v1949_v48, %v5648_v51 }
  0x6c   :  { %v5761_v34 = vsel %vm2122_vm7, %v2390_v40, %v2101_v15  ;;  %v1957_v43 = vrot.slane %v93_v26, %v5657_v1  ;;  %v2246_v44 = vrot.slane %v93_v26, %v5229_v41  ;;  %v2005_v62 = vrot.slane %v1845_v22, %v5648_v51 }
  0x6d   :  { %4930 = vmatmul.mubr.msk.f32.gmra.mrb[30].mxu0 %vm587_vm0, %v5350_v16  ;;  %v5774_v58 = vsel %vm2122_vm7, %v2402_v35, %v2113_v29  ;;  %v2154_v8 = vrot.slane %v5666_v61, %v5222_v37  ;;  %v2017_v22 = vrot.slane %v1857_v38, %v5648_v51  ;;  %v2306_v11 = vrot.slane %v2146_v20, %v5207_v28 }
  0x6e   :  { %4936 = vmatmul.mubr.msk.f32.gmra.mrb[30].mxu1 %vm587_vm0, %v5350_v16  ;;  %2806 = vmatprep.mubr.f32.mxu0 %v6802_v2  ;;  %v1937_v16 = vrot.slane %v92_v53, %v5626_v27  ;;  %v5754_v53 = vsel %vm2122_vm7, %v2382_v13, %v2093_v10  ;;  %6820 = vst [vmem:[#allocation9_spill] sm:$0xff] %v5774_v58  ;;  %v88_v15 = vmul.f32 2.0, %v80_v56  ;;  %v89_v17 = vmul.f32 2.0, %v81_v59 }
  0x6f   :  { %2895 = vmatprep.mubr.f32.mxu1 %v6802_v2  ;;  %v2117_v3 = vrot.slane %v1957_v43, %v5648_v51  ;;  %v2406_v26 = vrot.slane %v2246_v44, %v5207_v28  ;;  %v1853_v13 = vrot.slane %v5666_v61, %v5648_v51  ;;  %v5810_v38 = vmul.f32 2.0, %v82_v14 }
  0x70   :  { %v2097_v45 = vrot.slane %v1937_v16, %v5648_v51  ;;  %v2410_v16 = vrot.slane %v2250_v46, %v5207_v28  ;;  %v5816_v20 = vsel %vm2122_vm7, %v5676_v55, %v5673_v4  ;;  %v5822_v30 = vsel %vm2122_vm7, %v5682_v25, %v5679_v24 }
  0x71   :  { %v2025_v47 = vrot.slane %v1865_v6, %v5648_v51  ;;  %v2314_v52 = vrot.slane %v2154_v8, %v5207_v28  ;;  %v2142_v56 = vrot.slane %v5666_v61, %v5207_v28  ;;  %v5838_v59 = vsel %vm2122_vm7, %v2306_v11, %v2017_v22 }
  0x72   :  { %v5740_v12 = vsel %vm2122_vm7, %v2386_v60, %v2097_v45  ;;  %v1997_v45 = vrot.slane %v1837_v54, %v5648_v51  ;;  %v2398_v60 = vrot.slane %v2238_v7, %v5207_v28  ;;  %v5780_v63 = vsel %vm2122_vm7, %v2410_v16, %v2121_v19 }
  0x73   :  { %6821 = vst [vmem:[#allocation10_spill] sm:$0xff] %v5780_v63  ;;  %v2294_v54 = vrot.slane %v2134_v31, %v5207_v28  ;;  %v5799_v31 = vsel %vm2122_vm7, %v2406_v26, %v2117_v3  ;;  %v5841_v0 = vrot.slane %v1853_v13, %v5648_v51  ;;  %v1861_v14 = vrot.slane %v5666_v61, %v5657_v1 }
  0x74   :  { %v5791_v10 = vsel %vm2122_vm7, %v2398_v60, %v2109_v42  ;;  %6823 = vst [vmem:[#allocation12_spill] sm:$0xff] %v5799_v31  ;;  %v5826_v32 = vsel %vm2122_vm7, %v2286_v57, %v1997_v45  ;;  %v2150_v4 = vrot.slane %v5666_v61, %v5229_v41  ;;  %v1873_v55 = vrot.slane %v88_v15, %v5626_v27 }
  0x75   :  { %6822 = vst [vmem:[#allocation11_spill] sm:$0xff] %v5791_v10  ;;  %v5830_v33 = vsel %vm2122_vm7, %v2294_v54, %v2005_v62  ;;  %v2162_v24 = vrot.slane %v88_v15, %v5219_v36  ;;  %v1881_v25 = vrot.slane %v88_v15, %v5630_v18  ;;  %v2170_v40 = vrot.slane %v88_v15, %v5222_v37 }
  0x76   :  { %v1869_v21 = vrot.slane %v88_v15, %v5648_v51  ;;  %v2158_v49 = vrot.slane %v88_v15, %v5207_v28  ;;  %v1877_v29 = vrot.slane %v88_v15, %v5657_v1  ;;  %v2166_v46 = vrot.slane %v88_v15, %v5229_v41 }
  0x77   :  { %v5857_v48 = vsel %vm2122_vm7, %v2314_v52, %v2025_v47  ;;  %v1889_v61 = vrot.slane %v89_v17, %v5626_v27  ;;  %v2178_v35 = vrot.slane %v89_v17, %v5219_v36  ;;  %v1897_v19 = vrot.slane %v89_v17, %v5630_v18 }
  0x78   :  { %v2302_v7 = vrot.slane %v2142_v56, %v5207_v28  ;;  %v2021_v16 = vrot.slane %v1861_v14, %v5648_v51  ;;  %v2310_v42 = vrot.slane %v2150_v4, %v5207_v28  ;;  %v2186_v43 = vrot.slane %v89_v17, %v5222_v37 }
  0x79   :  { %v2033_v44 = vrot.slane %v1873_v55, %v5648_v51  ;;  %v2322_v45 = vrot.slane %v2162_v24, %v5207_v28  ;;  %v2041_v57 = vrot.slane %v1881_v25, %v5648_v51  ;;  %v2330_v60 = vrot.slane %v2170_v40, %v5207_v28 }
  0x7a   :  { %v2029_v62 = vrot.slane %v1869_v21, %v5648_v51  ;;  %v2318_v3 = vrot.slane %v2158_v49, %v5207_v28  ;;  %v2037_v26 = vrot.slane %v1877_v29, %v5648_v51  ;;  %v2326_v54 = vrot.slane %v2166_v46, %v5207_v28 }
  0x7b   :  { %v2049_v6 = vrot.slane %v1889_v61, %v5648_v51  ;;  %v2338_v8 = vrot.slane %v2178_v35, %v5207_v28  ;;  %v2057_v22 = vrot.slane %v1897_v19, %v5648_v51  ;;  %v1885_v11 = vrot.slane %v89_v17, %v5648_v51 }
  0x7c   :  { %v2346_v13 = vrot.slane %v2186_v43, %v5207_v28  ;;  %v2174_v15 = vrot.slane %v89_v17, %v5207_v28  ;;  %v1893_v47 = vrot.slane %v89_v17, %v5657_v1  ;;  %v2182_v52 = vrot.slane %v89_v17, %v5229_v41 }
  0x7d   :  { %v1905_v56 = vrot.slane %v5810_v38, %v5626_v27  ;;  %v2194_v14 = vrot.slane %v5810_v38, %v5219_v36  ;;  %v1913_v4 = vrot.slane %v5810_v38, %v5630_v18  ;;  %v2202_v55 = vrot.slane %v5810_v38, %v5222_v37 }
  0x7e   :  { %v1901_v24 = vrot.slane %v5810_v38, %v5648_v51  ;;  %v2190_v25 = vrot.slane %v5810_v38, %v5207_v28  ;;  %v1909_v17 = vrot.slane %v5810_v38, %v5657_v1  ;;  %v2198_v40 = vrot.slane %v5810_v38, %v5229_v41 }
  0x7f   :  { %v1921_v21 = vrot.slane %v5645_v50, %v5626_v27  ;;  %v2210_v49 = vrot.slane %v5645_v50, %v5219_v36  ;;  %v1929_v29 = vrot.slane %v5645_v50, %v5630_v18  ;;  %v2218_v46 = vrot.slane %v5645_v50, %v5222_v37 }
  0x80   :  { %v2045_v61 = vrot.slane %v1885_v11, %v5648_v51  ;;  %v2334_v35 = vrot.slane %v2174_v15, %v5207_v28  ;;  %v2053_v1 = vrot.slane %v1893_v47, %v5648_v51  ;;  %v2342_v41 = vrot.slane %v2182_v52, %v5207_v28 }
  0x81   :  { %v2065_v38 = vrot.slane %v1905_v56, %v5648_v51  ;;  %v2354_v27 = vrot.slane %v2194_v14, %v5207_v28  ;;  %v2073_v36 = vrot.slane %v1913_v4, %v5648_v51  ;;  %v2362_v19 = vrot.slane %v2202_v55, %v5207_v28 }
  0x82   :  { %v2061_v18 = vrot.slane %v1901_v24, %v5648_v51  ;;  %v2350_v37 = vrot.slane %v2190_v25, %v5207_v28  ;;  %v2069_v50 = vrot.slane %v1909_v17, %v5648_v51  ;;  %v2358_v43 = vrot.slane %v2198_v40, %v5207_v28 }
  0x83   :  { %v2081_v11 = vrot.slane %v1921_v21, %v5648_v51  ;;  %v2370_v15 = vrot.slane %v2210_v49, %v5207_v28  ;;  %v2089_v47 = vrot.slane %v1929_v29, %v5648_v51  ;;  %v2378_v52 = vrot.slane %v2218_v46, %v5207_v28 }
  0x84   :  { %v5925_v56 = vsel %vm2122_vm7, %v2302_v7, %v5841_v0  ;;  %v5929_v14 = vsel %vm2122_vm7, %v2310_v42, %v2021_v16  ;;  %v5933_v4 = vsel %vm2122_vm7, %v2322_v45, %v2033_v44  ;;  %v5937_v55 = vsel %vm2122_vm7, %v2330_v60, %v2041_v57 }
  0x85   :  { %v5941_v28 = vsel %vm2122_vm7, %v2318_v3, %v2029_v62  ;;  %v5945_v51 = vsel %vm2122_vm7, %v2326_v54, %v2037_v26  ;;  %v5949_v0 = vsel %vm2122_vm7, %v2338_v8, %v2049_v6  ;;  %v5953_v7 = vsel %vm2122_vm7, %v2346_v13, %v2057_v22 }
  0x86   :  { %v5957_v16 = vsel %vm2122_vm7, %v2334_v35, %v2045_v61  ;;  %v5961_v42 = vsel %vm2122_vm7, %v2342_v41, %v2053_v1  ;;  %v5965_v44 = vsel %vm2122_vm7, %v2354_v27, %v2065_v38  ;;  %v5969_v45 = vsel %vm2122_vm7, %v2362_v19, %v2073_v36 }
  0x87   :  { %v5977_v62 = vsel %vm2122_vm7, %v2350_v37, %v2061_v18  ;;  %v5981_v3 = vsel %vm2122_vm7, %v2358_v43, %v2069_v50  ;;  %v5985_v26 = vsel %vm2122_vm7, %v2370_v15, %v2081_v11  ;;  %v5989_v54 = vsel %vm2122_vm7, %v2378_v52, %v2089_v47 }
  0x88   :  { %vm2729_vm0 = vcmask 64512  }
  0x94   :  { %v5971_v57 = vpop.permute.xlu1 %2482  ;;  %v5973_v60 = vpop.permute.xlu0 %2446 }
  0x95   :  { %v2450_v6 = vmul.f32 %v5973_v60, %v5816_v20  ;;  %v2452_v8 = vmul.f32 %v5973_v60, %v5822_v30  ;;  %v2449_v22 = vmul.f32 %v5973_v60, %v5826_v32  ;;  %v2451_v13 = vmul.f32 %v5973_v60, %v5830_v33 }
  0x96   :  { %v2454_v24 = vmul.f32 %v5973_v60, %v5838_v59  ;;  %v2456_v25 = vmul.f32 %v5973_v60, %v5857_v48  ;;  %v2453_v17 = vmul.f32 %v5973_v60, %v5925_v56  ;;  %v2455_v40 = vmul.f32 %v5973_v60, %v5929_v14 }
  0x97   :  { %v2486_v21 = vadd.f32 %v5971_v57, %v2450_v6  ;;  %v2488_v49 = vadd.f32 %v5971_v57, %v2452_v8  ;;  %v2485_v29 = vadd.f32 %v5971_v57, %v2449_v22  ;;  %v2487_v46 = vadd.f32 %v5971_v57, %v2451_v13 }
  0x98   :  { %v2490_v61 = vadd.f32 %v5971_v57, %v2454_v24  ;;  %v2492_v35 = vadd.f32 %v5971_v57, %v2456_v25  ;;  %v2489_v1 = vadd.f32 %v5971_v57, %v2453_v17  ;;  %v2491_v41 = vadd.f32 %v5971_v57, %v2455_v40 }
  0x99   :  { %v6015_v38 = vpop.permute.xlu1 %2554  ;;  %v6017_v27 = vpop.permute.xlu0 %2518  ;;  %v2458_v36 = vmul.f32 %v5973_v60, %v5933_v4  ;;  %v2460_v19 = vmul.f32 %v5973_v60, %v5937_v55  ;;  %v6025_v18 = vmul.f32 %v5973_v60, %v5941_v28  ;;  %v6029_v37 = vmul.f32 %v5973_v60, %v5945_v51 }
  0x9a   :  { %v2522_v50 = vmul.f32 %v6017_v27, %v5816_v20  ;;  %v2524_v43 = vmul.f32 %v6017_v27, %v5822_v30  ;;  %v2521_v11 = vmul.f32 %v6017_v27, %v5826_v32  ;;  %v2523_v15 = vmul.f32 %v6017_v27, %v5830_v33 }
  0x9b   :  { %v2526_v47 = vmul.f32 %v6017_v27, %v5838_v59  ;;  %v2528_v52 = vmul.f32 %v6017_v27, %v5857_v48  ;;  %v2525_v6 = vmul.f32 %v6017_v27, %v5925_v56  ;;  %v2527_v8 = vmul.f32 %v6017_v27, %v5929_v14 }
  0x9c   :  { %v2558_v22 = vadd.f32 %v6015_v38, %v2522_v50  ;;  %v2560_v13 = vadd.f32 %v6015_v38, %v2524_v43  ;;  %v2557_v24 = vadd.f32 %v6015_v38, %v2521_v11  ;;  %v2559_v25 = vadd.f32 %v6015_v38, %v2523_v15 }
  0x9d   :  { %v2562_v17 = vadd.f32 %v6015_v38, %v2526_v47  ;;  %v2564_v40 = vadd.f32 %v6015_v38, %v2528_v52  ;;  %v2561_v2 = vadd.f32 %v6015_v38, %v2525_v6  ;;  %v2563_v9 = vadd.f32 %v6015_v38, %v2527_v8 }
  0x9e   :  { %v6055_v31 = vpop.permute.xlu1 %2622  ;;  %v6057_v10 = vpop.permute.xlu0 %2658  ;;  %v2590_v50 = vmul.f32 %v2558_v22, %v2486_v21  ;;  %v2592_v63 = vmul.f32 %v2560_v13, %v2488_v49  ;;  %v2589_v43 = vmul.f32 %v2557_v24, %v2485_v29  ;;  %v2591_v58 = vmul.f32 %v2559_v25, %v2487_v46  ;;  %v6082_v24 = vld [vmem:[%s6799_s2] sm:$0xff] }
  0x9f   :  { %v2626_v11 = vmul.f32 %v6055_v31, %v5816_v20  ;;  %v2628_v15 = vmul.f32 %v6055_v31, %v5822_v30  ;;  %v2625_v47 = vmul.f32 %v6055_v31, %v5826_v32  ;;  %v2627_v52 = vmul.f32 %v6055_v31, %v5830_v33 }
  0xa0   :  { %v2594_v6 = vmul.f32 %v2562_v17, %v2490_v61  ;;  %v2630_v8 = vmul.f32 %v6055_v31, %v5838_v59  ;;  %v2596_v21 = vmul.f32 %v2564_v40, %v2492_v35  ;;  %v2632_v49 = vmul.f32 %v6055_v31, %v5857_v48 }
  0xa1   :  { %v2662_v29 = vadd.f32 %v6057_v10, %v2626_v11  ;;  %v2664_v20 = vadd.f32 %v6057_v10, %v2628_v15  ;;  %v2661_v30 = vadd.f32 %v6057_v10, %v2625_v47  ;;  %v2663_v46 = vadd.f32 %v6057_v10, %v2627_v52 }
  0xa2   :  { %v2666_v32 = vadd.f32 %v6057_v10, %v2630_v8  ;;  %v2668_v33 = vadd.f32 %v6057_v10, %v2632_v49  ;;  %v2593_v61 = vmul.f32 %v2561_v2, %v2489_v1  ;;  %v2629_v59 = vmul.f32 %v6055_v31, %v5925_v56 }
  0xa3   :  { %v2694_v35 = vmul.f32 %v2662_v29, %v2590_v50  ;;  %v2696_v22 = vmul.f32 %v2664_v20, %v2592_v63  ;;  %v2693_v13 = vmul.f32 %v2661_v30, %v2589_v43  ;;  %v2695_v48 = vmul.f32 %v2663_v46, %v2591_v58 }
  0xa4   :  { %v2698_v25 = vmul.f32 %v2666_v32, %v2594_v6  ;;  %v2700_v17 = vmul.f32 %v2668_v33, %v2596_v21  ;;  %v2665_v40 = vadd.f32 %v6057_v10, %v2629_v59  ;;  %v2595_v11 = vmul.f32 %v2563_v9, %v2491_v41 }
  0xa5   :  { %2742 = vmatprep.subr.mxu0 %v2694_v35  ;;  %2831 = vmatprep.subr.mxu1 %v2696_v22  ;;  %v2631_v2 = vmul.f32 %v6055_v31, %v5929_v14  ;;  %v2494_v56 = vadd.f32 %v5971_v57, %v2458_v36  ;;  %v2530_v58 = vmul.f32 %v6017_v27, %v5933_v4  ;;  %v6824_v6 = vmov 0.0  }
  0xa6   :  { %2743 = vmatpush1.msra.mxu0 %v2693_v13  ;;  %2832 = vmatpush1.msra.mxu1 %v2695_v48  ;;  %v2697_v63 = vmul.f32 %v2665_v40, %v2593_v61  ;;  %v2634_v1 = vmul.f32 %v6055_v31, %v5933_v4  ;;  %v2496_v50 = vadd.f32 %v5971_v57, %v2460_v19  ;;  %v6107_v19 = vld [vmem:[%s6799_s2 + $0x8] sm:$0xff] }
  0xa7   :  { %4937 = vmatmul.mubr.msk.f32.vlgmr.msra.gmra.mrb[32].mxu0 %vm2729_vm0, %v6082_v24  ;;  %4941 = vmatmul.mubr.msk.f32.vlgmr.msra.gmra.mrb[32].mxu1 %vm2729_vm0, %v6082_v24  ;;  %v2667_v9 = vadd.f32 %v6057_v10, %v2631_v2  ;;  %v2566_v14 = vadd.f32 %v6015_v38, %v2530_v58  ;;  %v2532_v41 = vmul.f32 %v6017_v27, %v5937_v55 }
  0xa8   :  { %2920 = vmatprep.subr.mxu0 %v2698_v25  ;;  %3009 = vmatprep.subr.mxu1 %v2700_v17  ;;  %v2670_v36 = vadd.f32 %v6057_v10, %v2634_v1  ;;  %v2636_v4 = vmul.f32 %v6055_v31, %v5937_v55  ;;  %v2493_v43 = vadd.f32 %v5971_v57, %v6025_v18  ;;  %v6157_v17 = vld [vmem:[%s6799_s2 + $0x18] sm:$0xff] }
  0xa9   :  { %2921 = vmatpush1.msra.mxu0 %v2697_v63  ;;  %v2699_v15 = vmul.f32 %v2667_v9, %v2595_v11  ;;  %v2598_v47 = vmul.f32 %v2566_v14, %v2494_v56  ;;  %v2568_v52 = vadd.f32 %v6015_v38, %v2532_v41  ;;  %2812 = vmatprep.mubr.f32.mxu0 %v6824_v6 }
  0xaa   :  { %v2672_v8 = vadd.f32 %v6057_v10, %v2636_v4  ;;  %2901 = vmatprep.mubr.f32.mxu1 %v6824_v6  ;;  %v2529_v55 = vmul.f32 %v6017_v27, %v5941_v28  ;;  %v2633_v21 = vmul.f32 %v6055_v31, %v5941_v28  ;;  %v2495_v18 = vadd.f32 %v5971_v57, %v6029_v37  ;;  %v6131_v28 = vld [vmem:[%s6799_s2 + $0x10] sm:$0xff]  ;;  %s5156_s2 = smov [#allocation5]  }
  0xab   :  { %3010 = vmatpush1.msra.mxu1 %v2699_v15  ;;  %v2702_v49 = vmul.f32 %v2670_v36, %v2598_v47  ;;  %v2600_v29 = vmul.f32 %v2568_v52, %v2496_v50  ;;  %4938 = vmatmul.mubr.msk.f32.gmra.mrb[34].mxu0 %vm2729_vm0, %v6107_v19  ;;  %v2531_v20 = vmul.f32 %v6017_v27, %v5945_v51  ;;  %s4760_s12 = sshll.u32 %s5156_s2, 4  ;;  %s4761_s12 = int_to_ptr.vmem [resolvable:$true] %s4760_s12 }
  0xac   :  { %4942 = vmatmul.mubr.msk.f32.gmra.mrb[34].mxu1 %vm2729_vm0, %v6107_v19  ;;  %2818 = vmatprep.mubr.f32.mxu0 %v6824_v6  ;;  %v2565_v37 = vadd.f32 %v6015_v38, %v2529_v55  ;;  %v2669_v30 = vadd.f32 %v6057_v10, %v2633_v21  ;;  %v2635_v46 = vmul.f32 %v6055_v31, %v5945_v51  ;;  %s5120_s13 = scalar_lea.vmem %s4761_s12, 512  ;;  %p5125_p9 = scmp.lt.s32.totalorder %s4761_s12, %s4761_s12 }
  0xad   :  { %3098 = vmatprep.subr.mxu0 %v2702_v49  ;;  %v2704_v32 = vmul.f32 %v2672_v8, %v2600_v29  ;;  %2907 = vmatprep.mubr.f32.mxu1 %v6824_v6  ;;  %v2567_v33 = vadd.f32 %v6015_v38, %v2531_v20  ;;  %v2462_v61 = vmul.f32 %v5973_v60, %v5949_v0  ;;  %p5121_p8 = scmp.ne.s32.totalorder %s4761_s12, %s5120_s13  ;;  %p5126_p10 = scmp.lt.s32.totalorder %s5120_s13, %s5120_s13 }
  0xae   :  { %v2597_v59 = vmul.f32 %v2565_v37, %v2493_v43  ;;  %v2671_v35 = vadd.f32 %v6057_v10, %v2635_v46  ;;  %v2534_v22 = vmul.f32 %v6017_v27, %v5949_v0  ;;  %v2638_v13 = vmul.f32 %v6055_v31, %v5949_v0 }
  0xaf   :  { %3187 = vmatprep.subr.mxu1 %v2704_v32  ;;  %4939 = vmatmul.mubr.msk.f32.gmra.mrb[36].mxu0 %vm2729_vm0, %v6131_v28  ;;  %v2599_v51 = vmul.f32 %v2567_v33, %v2495_v18  ;;  %v2498_v48 = vadd.f32 %v5971_v57, %v2462_v61  ;;  %v2464_v25 = vmul.f32 %v5973_v60, %v5953_v7  ;;  %p5127_p11 = por %p5126_p10, %p5125_p9 }
  0xb0   :  { %4943 = vmatmul.mubr.msk.f32.gmra.mrb[36].mxu1 %vm2729_vm0, %v6131_v28  ;;  %2824 = vmatprep.mubr.f32.mxu0 %v6824_v6  ;;  %v2701_v0 = vmul.f32 %v2669_v30, %v2597_v59  ;;  %v2570_v40 = vadd.f32 %v6015_v38, %v2534_v22  ;;  %v2674_v11 = vadd.f32 %v6057_v10, %v2638_v13 }
  0xb1   :  { %2913 = vmatprep.mubr.f32.mxu1 %v6824_v6  ;;  %v2703_v2 = vmul.f32 %v2671_v35, %v2599_v51  ;;  %v2500_v56 = vadd.f32 %v5971_v57, %v2464_v25  ;;  %v2536_v58 = vmul.f32 %v6017_v27, %v5953_v7  ;;  %v2640_v63 = vmul.f32 %v6055_v31, %v5953_v7  ;;  %p5128_p12 = pnand %p5127_p11, %p5121_p8 }
  0xb2   :  { %v2602_v1 = vmul.f32 %v2570_v40, %v2498_v48  ;;  %v2461_v50 = vmul.f32 %v5973_v60, %v5957_v16  ;;  %v2533_v9 = vmul.f32 %v6017_v27, %v5957_v16  ;;  %v2637_v14 = vmul.f32 %v6055_v31, %v5957_v16 }
  0xb3   :  { %4940 = vmatmul.mubr.msk.f32.gmra.mrb[38].mxu0 %vm2729_vm0, %v6157_v17  ;;  %v2572_v41 = vadd.f32 %v6015_v38, %v2536_v58  ;;  %v2676_v36 = vadd.f32 %v6057_v10, %v2640_v63  ;;  %v2463_v7 = vmul.f32 %v5973_v60, %v5961_v42  ;;  %v2535_v4 = vmul.f32 %v6017_v27, %v5961_v42 }
  0xb4   :  { %4944 = vmatmul.mubr.msk.f32.gmra.mrb[38].mxu1 %vm2729_vm0, %v6157_v17  ;;  %2984 = vmatprep.mubr.f32.mxu0 %v6824_v6  ;;  %v2706_v43 = vmul.f32 %v2674_v11, %v2602_v1  ;;  %v2497_v16 = vadd.f32 %v5971_v57, %v2461_v50  ;;  %v2569_v15 = vadd.f32 %v6015_v38, %v2533_v9 }
  0xb5   :  { %3073 = vmatprep.mubr.f32.mxu1 %v6824_v6  ;;  %v2604_v47 = vmul.f32 %v2572_v41, %v2500_v56  ;;  %v2673_v52 = vadd.f32 %v6057_v10, %v2637_v14  ;;  %v2499_v8 = vadd.f32 %v5971_v57, %v2463_v7  ;;  %v2571_v55 = vadd.f32 %v6015_v38, %v2535_v4 }
  0xb6   :  { %v2601_v21 = vmul.f32 %v2569_v15, %v2497_v16  ;;  %v2639_v18 = vmul.f32 %v6055_v31, %v5961_v42  ;;  %v2466_v49 = vmul.f32 %v5973_v60, %v5965_v44  ;;  %v2538_v29 = vmul.f32 %v6017_v27, %v5965_v44 }
  0xb7   :  { %4945 = vmatmul.mubr.msk.f32.vlgmr.msra.gmra.mrb[40].mxu0 %vm2729_vm0, %v6082_v24  ;;  %v2708_v20 = vmul.f32 %v2676_v36, %v2604_v47  ;;  %v2603_v37 = vmul.f32 %v2571_v55, %v2499_v8  ;;  %v2642_v30 = vmul.f32 %v6055_v31, %v5965_v44  ;;  %v2468_v46 = vmul.f32 %v5973_v60, %v5969_v45 }
  0xb8   :  { %4949 = vmatmul.mubr.msk.f32.vlgmr.msra.gmra.mrb[40].mxu1 %vm2729_vm0, %v6082_v24  ;;  %3099 = vmatpush1.msra.mxu0 %v2701_v0  ;;  %v6204_v42 = vmul.f32 %v2673_v52, %v2601_v21  ;;  %v2675_v32 = vadd.f32 %v6057_v10, %v2639_v18  ;;  %v2502_v33 = vadd.f32 %v5971_v57, %v2466_v49 }
  0xb9   :  { %3188 = vmatpush1.msra.mxu1 %v2703_v2  ;;  %3276 = vmatprep.subr.mxu0 %v2706_v43  ;;  %v2574_v61 = vadd.f32 %v6015_v38, %v2538_v29  ;;  %v2678_v59 = vadd.f32 %v6057_v10, %v2642_v30  ;;  %v2504_v44 = vadd.f32 %v5971_v57, %v2468_v46 }
  0xba   :  { %3365 = vmatprep.subr.mxu1 %v2708_v20  ;;  %2990 = vmatprep.mubr.f32.mxu0 %v6824_v6  ;;  %v6212_v35 = vmul.f32 %v2675_v32, %v2603_v37  ;;  %v2540_v22 = vmul.f32 %v6017_v27, %v5969_v45  ;;  %v2644_v13 = vmul.f32 %v6055_v31, %v5969_v45 }
  0xbb   :  { %3079 = vmatprep.mubr.f32.mxu1 %v6824_v6  ;;  %4946 = vmatmul.mubr.msk.f32.gmra.mrb[42].mxu0 %vm2729_vm0, %v6107_v19  ;;  %v2606_v51 = vmul.f32 %v2574_v61, %v2502_v33  ;;  %v2465_v48 = vmul.f32 %v5973_v60, %v5977_v62  ;;  %v2537_v25 = vmul.f32 %v6017_v27, %v5977_v62 }
  0xbc   :  { %4950 = vmatmul.mubr.msk.f32.gmra.mrb[42].mxu1 %vm2729_vm0, %v6107_v19  ;;  %2996 = vmatprep.mubr.f32.mxu0 %v6824_v6  ;;  %v2576_v0 = vadd.f32 %v6015_v38, %v2540_v22  ;;  %v2680_v45 = vadd.f32 %v6057_v10, %v2644_v13  ;;  %v2641_v40 = vmul.f32 %v6055_v31, %v5977_v62 }
  0xbd   :  { %3085 = vmatprep.mubr.f32.mxu1 %v6824_v6  ;;  %v2710_v11 = vmul.f32 %v2678_v59, %v2606_v51  ;;  %v2501_v2 = vadd.f32 %v5971_v57, %v2465_v48  ;;  %v2573_v56 = vadd.f32 %v6015_v38, %v2537_v25  ;;  %v2467_v58 = vmul.f32 %v5973_v60, %v5981_v3 }
  0xbe   :  { %v2608_v63 = vmul.f32 %v2576_v0, %v2504_v44  ;;  %v2677_v1 = vadd.f32 %v6057_v10, %v2641_v40  ;;  %v2539_v50 = vmul.f32 %v6017_v27, %v5981_v3  ;;  %v2643_v9 = vmul.f32 %v6055_v31, %v5981_v3 }
  0xbf   :  { %4947 = vmatmul.mubr.msk.f32.gmra.mrb[44].mxu0 %vm2729_vm0, %v6131_v28  ;;  %v2605_v62 = vmul.f32 %v2573_v56, %v2501_v2  ;;  %v2503_v14 = vadd.f32 %v5971_v57, %v2467_v58  ;;  %v2470_v41 = vmul.f32 %v5973_v60, %v5985_v26  ;;  %v2542_v36 = vmul.f32 %v6017_v27, %v5985_v26 }
  0xc0   :  { %4951 = vmatmul.mubr.msk.f32.gmra.mrb[44].mxu1 %vm2729_vm0, %v6131_v28  ;;  %3002 = vmatprep.mubr.f32.mxu0 %v6824_v6  ;;  %v2712_v7 = vmul.f32 %v2680_v45, %v2608_v63  ;;  %v2575_v3 = vadd.f32 %v6015_v38, %v2539_v50  ;;  %v2679_v4 = vadd.f32 %v6057_v10, %v2643_v9 }
  0xc1   :  { %3091 = vmatprep.mubr.f32.mxu1 %v6824_v6  ;;  %v6255_v43 = vmul.f32 %v2677_v1, %v2605_v62  ;;  %v2506_v16 = vadd.f32 %v5971_v57, %v2470_v41  ;;  %v2578_v15 = vadd.f32 %v6015_v38, %v2542_v36  ;;  %v2646_v47 = vmul.f32 %v6055_v31, %v5985_v26 }
  0xc2   :  { %v2607_v52 = vmul.f32 %v2575_v3, %v2503_v14  ;;  %v2472_v8 = vmul.f32 %v5973_v60, %v5989_v54  ;;  %v2544_v55 = vmul.f32 %v6017_v27, %v5989_v54  ;;  %v2648_v21 = vmul.f32 %v6055_v31, %v5989_v54 }
  0xc3   :  { %4948 = vmatmul.mubr.msk.f32.gmra.mrb[46].mxu0 %vm2729_vm0, %v6157_v17  ;;  %v2610_v18 = vmul.f32 %v2578_v15, %v2506_v16  ;;  %v2682_v49 = vadd.f32 %v6057_v10, %v2646_v47  ;;  %v2469_v29 = vmul.f32 %v5973_v60, %v5719_v39  ;;  %v2541_v26 = vmul.f32 %v6017_v27, %v5719_v39 }
  0xc4   :  { %4952 = vmatmul.mubr.msk.f32.gmra.mrb[46].mxu1 %vm2729_vm0, %v6157_v17  ;;  %3162 = vmatprep.mubr.f32.mxu0 %v6824_v6  ;;  %v6277_v20 = vmul.f32 %v2679_v4, %v2607_v52  ;;  %v2508_v54 = vadd.f32 %v5971_v57, %v2472_v8  ;;  %v2580_v37 = vadd.f32 %v6015_v38, %v2544_v55 }
  0xc5   :  { %3251 = vmatprep.mubr.f32.mxu1 %v6824_v6  ;;  %v6282_v30 = vmul.f32 %v2682_v49, %v2610_v18  ;;  %v2684_v46 = vadd.f32 %v6057_v10, %v2648_v21  ;;  %v2505_v32 = vadd.f32 %v5971_v57, %v2469_v29  ;;  %v2577_v33 = vadd.f32 %v6015_v38, %v2541_v26  ;;  %v6825_v49 = vld [vmem:[#allocation9_spill] sm:$0xff] }
  0xc6   :  { %v2612_v61 = vmul.f32 %v2580_v37, %v2508_v54  ;;  %v2645_v59 = vmul.f32 %v6055_v31, %v5719_v39  ;;  %v2471_v44 = vmul.f32 %v5973_v60, %v5733_v5  ;;  %v2543_v22 = vmul.f32 %v6017_v27, %v5733_v5 }
  0xc7   :  { %4953 = vmatmul.mubr.msk.f32.vlgmr.msra.gmra.mrb[48].mxu0 %vm2729_vm0, %v6082_v24  ;;  %v2609_v13 = vmul.f32 %v2577_v33, %v2505_v32  ;;  %v2647_v51 = vmul.f32 %v6055_v31, %v5733_v5  ;;  %v2474_v48 = vmul.f32 %v5973_v60, %v5740_v12  ;;  %v2546_v25 = vmul.f32 %v6017_v27, %v5740_v12  ;;  %v6826_v33 = vld [vmem:[#allocation10_spill] sm:$0xff] }
  0xc8   :  { %4957 = vmatmul.mubr.msk.f32.vlgmr.msra.gmra.mrb[48].mxu1 %vm2729_vm0, %v6082_v24  ;;  %3277 = vmatpush1.msra.mxu0 %v6204_v42  ;;  %v6304_v39 = vmul.f32 %v2684_v46, %v2612_v61  ;;  %v2681_v0 = vadd.f32 %v6057_v10, %v2645_v59  ;;  %v2507_v45 = vadd.f32 %v5971_v57, %v2471_v44 }
  0xc9   :  { %3366 = vmatpush1.msra.mxu1 %v6212_v35  ;;  %3454 = vmatprep.subr.mxu0 %v2710_v11  ;;  %v2579_v5 = vadd.f32 %v6015_v38, %v2543_v22  ;;  %v2683_v40 = vadd.f32 %v6057_v10, %v2647_v51  ;;  %v2510_v2 = vadd.f32 %v5971_v57, %v2474_v48 }
  0xca   :  { %3543 = vmatprep.subr.mxu1 %v2712_v7  ;;  %3168 = vmatprep.mubr.f32.mxu0 %v6824_v6  ;;  %v6313_v56 = vmul.f32 %v2681_v0, %v2609_v13  ;;  %v2582_v42 = vadd.f32 %v6015_v38, %v2546_v25  ;;  %v2650_v58 = vmul.f32 %v6055_v31, %v5740_v12 }
  0xcb   :  { %3257 = vmatprep.mubr.f32.mxu1 %v6824_v6  ;;  %4954 = vmatmul.mubr.msk.f32.gmra.mrb[50].mxu0 %vm2729_vm0, %v6107_v19  ;;  %v2611_v35 = vmul.f32 %v2579_v5, %v2507_v45  ;;  %v2476_v11 = vmul.f32 %v5973_v60, %v5747_v23  ;;  %v2548_v63 = vmul.f32 %v6017_v27, %v5747_v23  ;;  %v6827_v5 = vld [vmem:[#allocation11_spill] sm:$0xff] }
  0xcc   :  { %4958 = vmatmul.mubr.msk.f32.gmra.mrb[50].mxu1 %vm2729_vm0, %v6107_v19  ;;  %3174 = vmatprep.mubr.f32.mxu0 %v6824_v6  ;;  %v2614_v1 = vmul.f32 %v2582_v42, %v2510_v2  ;;  %v2686_v12 = vadd.f32 %v6057_v10, %v2650_v58  ;;  %v2652_v50 = vmul.f32 %v6055_v31, %v5747_v23 }
  0xcd   :  { %3263 = vmatprep.mubr.f32.mxu1 %v6824_v6  ;;  %v6332_v9 = vmul.f32 %v2683_v40, %v2611_v35  ;;  %v2512_v62 = vadd.f32 %v5971_v57, %v2476_v11  ;;  %v2584_v14 = vadd.f32 %v6015_v38, %v2548_v63  ;;  %v2473_v41 = vmul.f32 %v5973_v60, %v5754_v53  ;;  %v6828_v11 = vld [vmem:[#allocation12_spill] sm:$0xff] }
  0xce   :  { %v6338_v36 = vmul.f32 %v2686_v12, %v2614_v1  ;;  %v2688_v7 = vadd.f32 %v6057_v10, %v2652_v50  ;;  %v2545_v3 = vmul.f32 %v6017_v27, %v5754_v53  ;;  %v2649_v23 = vmul.f32 %v6055_v31, %v5754_v53 }
  0xcf   :  { %4955 = vmatmul.mubr.msk.f32.gmra.mrb[52].mxu0 %vm2729_vm0, %v6131_v28  ;;  %v2616_v4 = vmul.f32 %v2584_v14, %v2512_v62  ;;  %v2509_v16 = vadd.f32 %v5971_v57, %v2473_v41  ;;  %v2475_v15 = vmul.f32 %v5973_v60, %v5761_v34  ;;  %v2547_v47 = vmul.f32 %v6017_v27, %v5761_v34 }
  0xd0   :  { %4959 = vmatmul.mubr.msk.f32.gmra.mrb[52].mxu1 %vm2729_vm0, %v6131_v28  ;;  %3180 = vmatprep.mubr.f32.mxu0 %v6824_v6  ;;  %v2581_v52 = vadd.f32 %v6015_v38, %v2545_v3  ;;  %v2685_v53 = vadd.f32 %v6057_v10, %v2649_v23  ;;  %v2651_v8 = vmul.f32 %v6055_v31, %v5761_v34 }
  0xd1   :  { %3269 = vmatprep.mubr.f32.mxu1 %v6824_v6  ;;  %v6360_v55 = vmul.f32 %v2688_v7, %v2616_v4  ;;  %v2511_v21 = vadd.f32 %v5971_v57, %v2475_v15  ;;  %v2583_v18 = vadd.f32 %v6015_v38, %v2547_v47  ;;  %v2478_v29 = vmul.f32 %v5973_v60, %v6825_v49 }
  0xd2   :  { %v2613_v26 = vmul.f32 %v2581_v52, %v2509_v16  ;;  %v2687_v54 = vadd.f32 %v6057_v10, %v2651_v8  ;;  %v2550_v37 = vmul.f32 %v6017_v27, %v6825_v49  ;;  %v2654_v34 = vmul.f32 %v6055_v31, %v6825_v49 }
  0xd3   :  { %4956 = vmatmul.mubr.msk.f32.gmra.mrb[54].mxu0 %vm2729_vm0, %v6157_v17  ;;  %v2615_v46 = vmul.f32 %v2583_v18, %v2511_v21  ;;  %v2514_v32 = vadd.f32 %v5971_v57, %v2478_v29  ;;  %v2480_v61 = vmul.f32 %v5973_v60, %v6826_v33  ;;  %v2552_v59 = vmul.f32 %v6017_v27, %v6826_v33 }
  0xd4   :  { %4960 = vmatmul.mubr.msk.f32.gmra.mrb[54].mxu1 %vm2729_vm0, %v6157_v17  ;;  %3340 = vmatprep.mubr.f32.mxu0 %v6824_v6  ;;  %v6381_v44 = vmul.f32 %v2685_v53, %v2613_v26  ;;  %v2586_v22 = vadd.f32 %v6015_v38, %v2550_v37  ;;  %v2690_v13 = vadd.f32 %v6057_v10, %v2654_v34 }
  0xd5   :  { %3429 = vmatprep.mubr.f32.mxu1 %v6824_v6  ;;  %v6386_v51 = vmul.f32 %v2687_v54, %v2615_v46  ;;  %v2516_v48 = vadd.f32 %v5971_v57, %v2480_v61  ;;  %v2588_v25 = vadd.f32 %v6015_v38, %v2552_v59  ;;  %v2656_v0 = vmul.f32 %v6055_v31, %v6826_v33 }
  0xd6   :  { %v2618_v45 = vmul.f32 %v2586_v22, %v2514_v32  ;;  %v2477_v40 = vmul.f32 %v5973_v60, %v6827_v5  ;;  %v2549_v2 = vmul.f32 %v6017_v27, %v6827_v5  ;;  %v2653_v42 = vmul.f32 %v6055_v31, %v6827_v5 }
  0xd7   :  { %4961 = vmatmul.mubr.msk.f32.vlgmr.msra.gmra.mrb[56].mxu0 %vm2729_vm0, %v6082_v24  ;;  %v2620_v58 = vmul.f32 %v2588_v25, %v2516_v48  ;;  %v2692_v35 = vadd.f32 %v6057_v10, %v2656_v0  ;;  %v2479_v63 = vmul.f32 %v5973_v60, %v6828_v11  ;;  %v2551_v1 = vmul.f32 %v6017_v27, %v6828_v11 }
  0xd8   :  { %4965 = vmatmul.mubr.msk.f32.vlgmr.msra.gmra.mrb[56].mxu1 %vm2729_vm0, %v6082_v24  ;;  %3455 = vmatpush1.msra.mxu0 %v6255_v43  ;;  %v2722_v12 = vmul.f32 %v2690_v13, %v2618_v45  ;;  %v2513_v50 = vadd.f32 %v5971_v57, %v2477_v40  ;;  %v2585_v62 = vadd.f32 %v6015_v38, %v2549_v2 }
  0xd9   :  { %3544 = vmatpush1.msra.mxu1 %v6277_v20  ;;  %3632 = vmatprep.subr.mxu0 %v6282_v30  ;;  %v2724_v14 = vmul.f32 %v2692_v35, %v2620_v58  ;;  %v2689_v60 = vadd.f32 %v6057_v10, %v2653_v42  ;;  %v2515_v41 = vadd.f32 %v5971_v57, %v2479_v63 }
  0xda   :  { %3721 = vmatprep.subr.mxu1 %v6304_v39  ;;  %3346 = vmatprep.mubr.f32.mxu0 %v6824_v6  ;;  %v2617_v27 = vmul.f32 %v2585_v62, %v2513_v50  ;;  %v2587_v43 = vadd.f32 %v6015_v38, %v2551_v1  ;;  %v2655_v7 = vmul.f32 %v6055_v31, %v6828_v11 }
  0xdb   :  { %3435 = vmatprep.mubr.f32.mxu1 %v6824_v6  ;;  %4962 = vmatmul.mubr.msk.f32.gmra.mrb[58].mxu0 %vm2729_vm0, %v6107_v19 }
  0xdc   :  { %4966 = vmatmul.mubr.msk.f32.gmra.mrb[58].mxu1 %vm2729_vm0, %v6107_v19  ;;  %3352 = vmatprep.mubr.f32.mxu0 %v6824_v6  ;;  %v2721_v57 = vmul.f32 %v2689_v60, %v2617_v27  ;;  %v2619_v20 = vmul.f32 %v2587_v43, %v2515_v41  ;;  %v2691_v30 = vadd.f32 %v6057_v10, %v2655_v7 }
  0xdd   :  { %3441 = vmatprep.mubr.f32.mxu1 %v6824_v6 }
  0xde   :  { %v2723_v38 = vmul.f32 %v2691_v30, %v2619_v20 }
  0xdf   :  { %4963 = vmatmul.mubr.msk.f32.gmra.mrb[60].mxu0 %vm2729_vm0, %v6131_v28 }
  0xe0   :  { %4967 = vmatmul.mubr.msk.f32.gmra.mrb[60].mxu1 %vm2729_vm0, %v6131_v28  ;;  %3358 = vmatprep.mubr.f32.mxu0 %v6824_v6 }
  0xe1   :  { %3447 = vmatprep.mubr.f32.mxu1 %v6824_v6 }
  0xe3   :  { %4964 = vmatmul.mubr.msk.f32.gmra.mrb[62].mxu0 %vm2729_vm0, %v6157_v17 }
  0xe4   :  { %4968 = vmatmul.mubr.msk.f32.gmra.mrb[62].mxu1 %vm2729_vm0, %v6157_v17  ;;  %3518 = vmatprep.mubr.f32.mxu0 %v6824_v6 }
  0xe5   :  { %3607 = vmatprep.mubr.f32.mxu1 %v6824_v6 }
  0xe7   :  { %4969 = vmatmul.mubr.msk.f32.vlgmr.msra.gmra.mrb[64].mxu0 %vm2729_vm0, %v6082_v24 }
  0xe8   :  { %4973 = vmatmul.mubr.msk.f32.vlgmr.msra.gmra.mrb[64].mxu1 %vm2729_vm0, %v6082_v24  ;;  %3633 = vmatpush1.msra.mxu0 %v6313_v56 }
  0xe9   :  { %3722 = vmatpush1.msra.mxu1 %v6332_v9  ;;  %3810 = vmatprep.subr.mxu0 %v6338_v36 }
  0xea   :  { %3899 = vmatprep.subr.mxu1 %v6360_v55  ;;  %3524 = vmatprep.mubr.f32.mxu0 %v6824_v6 }
  0xeb   :  { %3613 = vmatprep.mubr.f32.mxu1 %v6824_v6  ;;  %4970 = vmatmul.mubr.msk.f32.gmra.mrb[66].mxu0 %vm2729_vm0, %v6107_v19 }
  0xec   :  { %4974 = vmatmul.mubr.msk.f32.gmra.mrb[66].mxu1 %vm2729_vm0, %v6107_v19  ;;  %3530 = vmatprep.mubr.f32.mxu0 %v6824_v6 }
  0xed   :  { %3619 = vmatprep.mubr.f32.mxu1 %v6824_v6 }
  0xef   :  { %4971 = vmatmul.mubr.msk.f32.gmra.mrb[68].mxu0 %vm2729_vm0, %v6131_v28 }
  0xf0   :  { %4975 = vmatmul.mubr.msk.f32.gmra.mrb[68].mxu1 %vm2729_vm0, %v6131_v28  ;;  %3536 = vmatprep.mubr.f32.mxu0 %v6824_v6 }
  0xf1   :  { %3625 = vmatprep.mubr.f32.mxu1 %v6824_v6 }
  0xf3   :  { %4972 = vmatmul.mubr.msk.f32.gmra.mrb[70].mxu0 %vm2729_vm0, %v6157_v17 }
  0xf4   :  { %4976 = vmatmul.mubr.msk.f32.gmra.mrb[70].mxu1 %vm2729_vm0, %v6157_v17  ;;  %3696 = vmatprep.mubr.f32.mxu0 %v6824_v6 }
  0xf5   :  { %3785 = vmatprep.mubr.f32.mxu1 %v6824_v6 }
  0xf7   :  { %4977 = vmatmul.mubr.msk.f32.vlgmr.msra.gmra.mrb[72].mxu0 %vm2729_vm0, %v6082_v24 }
  0xf8   :  { %4981 = vmatmul.mubr.msk.f32.vlgmr.msra.gmra.mrb[72].mxu1 %vm2729_vm0, %v6082_v24  ;;  %3811 = vmatpush1.msra.mxu0 %v6381_v44 }
  0xf9   :  { %3900 = vmatpush1.msra.mxu1 %v6386_v51  ;;  %3988 = vmatprep.subr.mxu0 %v2722_v12 }
  0xfa   :  { %4077 = vmatprep.subr.mxu1 %v2724_v14  ;;  %3702 = vmatprep.mubr.f32.mxu0 %v6824_v6 }
  0xfb   :  { %3791 = vmatprep.mubr.f32.mxu1 %v6824_v6  ;;  %4978 = vmatmul.mubr.msk.f32.gmra.mrb[74].mxu0 %vm2729_vm0, %v6107_v19 }
  0xfc   :  { %4982 = vmatmul.mubr.msk.f32.gmra.mrb[74].mxu1 %vm2729_vm0, %v6107_v19  ;;  %3708 = vmatprep.mubr.f32.mxu0 %v6824_v6 }
  0xfd   :  { %3797 = vmatprep.mubr.f32.mxu1 %v6824_v6 }
  0xff   :  { %4979 = vmatmul.mubr.msk.f32.gmra.mrb[76].mxu0 %vm2729_vm0, %v6131_v28 }
 0x100   :  { %4983 = vmatmul.mubr.msk.f32.gmra.mrb[76].mxu1 %vm2729_vm0, %v6131_v28  ;;  %3714 = vmatprep.mubr.f32.mxu0 %v6824_v6 }
 0x101   :  { %3803 = vmatprep.mubr.f32.mxu1 %v6824_v6 }
 0x103   :  { %4980 = vmatmul.mubr.msk.f32.gmra.mrb[78].mxu0 %vm2729_vm0, %v6157_v17 }
 0x104   :  { %4984 = vmatmul.mubr.msk.f32.gmra.mrb[78].mxu1 %vm2729_vm0, %v6157_v17  ;;  %3874 = vmatprep.mubr.f32.mxu0 %v6824_v6  ;;  %v6493_v10 = vpop.f32.mrb[0].mxu0 }
 0x105   :  { %3963 = vmatprep.mubr.f32.mxu1 %v6824_v6  ;;  %v6495_v31 = vpop.f32.mrb[0].mxu1  ;;  %v6497_v39 = vpop.f32.mrb[1].mxu0 }
 0x106   :  { %v6501_v56 = vpop.f32.mrb[1].mxu1 }
 0x107   :  { %4985 = vmatmul.mubr.msk.f32.vlgmr.msra.gmra.mrb[80].mxu0 %vm2729_vm0, %v6082_v24 }
 0x108   :  { %4989 = vmatmul.mubr.msk.f32.vlgmr.msra.gmra.mrb[80].mxu1 %vm2729_vm0, %v6082_v24  ;;  %3989 = vmatpush1.msra.mxu0 %v2721_v57  ;;  %v6506_v9 = vpop.f32.mrb[2].mxu0 }
 0x109   :  { %4078 = vmatpush1.msra.mxu1 %v2723_v38  ;;  %3880 = vmatprep.mubr.f32.mxu0 %v6824_v6  ;;  %v6509_v36 = vpop.f32.mrb[2].mxu1  ;;  %v6511_v3 = vpop.f32.mrb[3].mxu0 }
 0x10a   :  { %3969 = vmatprep.mubr.f32.mxu1 %v6824_v6  ;;  %v6515_v23 = vpop.f32.mrb[3].mxu1 }
 0x10b   :  { %4986 = vmatmul.mubr.msk.f32.gmra.mrb[82].mxu0 %vm2729_vm0, %v6107_v19 }
 0x10c   :  { %4990 = vmatmul.mubr.msk.f32.gmra.mrb[82].mxu1 %vm2729_vm0, %v6107_v19  ;;  %3886 = vmatprep.mubr.f32.mxu0 %v6824_v6  ;;  %v6521_v4 = vpop.f32.mrb[4].mxu0 }
 0x10d   :  { %3975 = vmatprep.mubr.f32.mxu1 %v6824_v6  ;;  %v6523_v16 = vpop.f32.mrb[4].mxu1  ;;  %v6525_v15 = vpop.f32.mrb[5].mxu0 }
 0x10e   :  { %v6529_v47 = vpop.f32.mrb[5].mxu1 }
 0x10f   :  { %4987 = vmatmul.mubr.msk.f32.gmra.mrb[84].mxu0 %vm2729_vm0, %v6131_v28 }
 0x110   :  { %4991 = vmatmul.mubr.msk.f32.gmra.mrb[84].mxu1 %vm2729_vm0, %v6131_v28  ;;  %3892 = vmatprep.mubr.f32.mxu0 %v6824_v6  ;;  %v6535_v52 = vpop.f32.mrb[6].mxu0 }
 0x111   :  { %3981 = vmatprep.mubr.f32.mxu1 %v6824_v6  ;;  %v6537_v53 = vpop.f32.mrb[6].mxu1  ;;  %v6539_v8 = vpop.f32.mrb[7].mxu0 }
 0x112   :  { %v6543_v55 = vpop.f32.mrb[7].mxu1 }
 0x113   :  { %4988 = vmatmul.mubr.msk.f32.gmra.mrb[86].mxu0 %vm2729_vm0, %v6157_v17 }
 0x114   :  { %4992 = vmatmul.mubr.msk.f32.gmra.mrb[86].mxu1 %vm2729_vm0, %v6157_v17  ;;  %4052 = vmatprep.mubr.f32.mxu0 %v6824_v6  ;;  %v6549_v21 = vpop.f32.mrb[8].mxu0 }
 0x115   :  { %4141 = vmatprep.mubr.f32.mxu1 %v6824_v6  ;;  %v6551_v18 = vpop.f32.mrb[8].mxu1  ;;  %v6553_v49 = vpop.f32.mrb[9].mxu0 }
 0x116   :  { %v6557_v29 = vpop.f32.mrb[9].mxu1 }
 0x117   :  { %4993 = vmatmul.mubr.msk.f32.vlgmr.msra.gmra.mrb[88].mxu0 %vm2729_vm0, %v6082_v24 }
 0x118   :  { %4997 = vmatmul.mubr.msk.f32.vlgmr.msra.gmra.mrb[88].mxu1 %vm2729_vm0, %v6082_v24  ;;  %4058 = vmatprep.mubr.f32.mxu0 %v6824_v6  ;;  %v6563_v26 = vpop.f32.mrb[10].mxu0 }
 0x119   :  { %4147 = vmatprep.mubr.f32.mxu1 %v6824_v6  ;;  %v6565_v54 = vpop.f32.mrb[10].mxu1  ;;  %v6567_v37 = vpop.f32.mrb[11].mxu0 }
 0x11a   :  { %v6571_v34 = vpop.f32.mrb[11].mxu1 }
 0x11b   :  { %4994 = vmatmul.mubr.msk.f32.gmra.mrb[90].mxu0 %vm2729_vm0, %v6107_v19 }
 0x11c   :  { %4998 = vmatmul.mubr.msk.f32.gmra.mrb[90].mxu1 %vm2729_vm0, %v6107_v19  ;;  %4064 = vmatprep.mubr.f32.mxu0 %v6824_v6  ;;  %v6577_v24 = vpop.f32.mrb[12].mxu0 }
 0x11d   :  { %4153 = vmatprep.mubr.f32.mxu1 %v6824_v6  ;;  %v6579_v46 = vpop.f32.mrb[12].mxu1  ;;  %v6581_v32 = vpop.f32.mrb[13].mxu0 }
 0x11e   :  { %v6585_v33 = vpop.f32.mrb[13].mxu1 }
 0x11f   :  { %4995 = vmatmul.mubr.msk.f32.gmra.mrb[92].mxu0 %vm2729_vm0, %v6131_v28 }
 0x120   :  { %4999 = vmatmul.mubr.msk.f32.gmra.mrb[92].mxu1 %vm2729_vm0, %v6131_v28  ;;  %4070 = vmatprep.mubr.f32.mxu0 %v6824_v6  ;;  %v6591_v19 = vpop.f32.mrb[14].mxu0 }
 0x121   :  { %4159 = vmatprep.mubr.f32.mxu1 %v6824_v6  ;;  %v6593_v61 = vpop.f32.mrb[14].mxu1  ;;  %v6595_v59 = vpop.f32.mrb[15].mxu0 }
 0x122   :  { %v6599_v44 = vpop.f32.mrb[15].mxu1 }
 0x123   :  { %4996 = vmatmul.mubr.msk.f32.gmra.mrb[94].mxu0 %vm2729_vm0, %v6157_v17 }
 0x124   :  { %5000 = vmatmul.mubr.msk.f32.gmra.mrb[94].mxu1 %vm2729_vm0, %v6157_v17  ;;  %v6603_v22 = vpop.f32.mrb[16].mxu0 }
 0x125   :  { %v6605_v28 = vpop.f32.mrb[16].mxu1  ;;  %v6607_v13 = vpop.f32.mrb[17].mxu0 }
 0x126   :  { %v6609_v6 = vpop.f32.mrb[17].mxu1 }
 0x128   :  { %v6611_v51 = vpop.f32.mrb[18].mxu0 }
 0x129   :  { %v6613_v48 = vpop.f32.mrb[18].mxu1  ;;  %v6615_v25 = vpop.f32.mrb[19].mxu0 }
 0x12a   :  { %6829 = vst [vmem:[#allocation9_spill] sm:$0xff] %v6613_v48  ;;  %6830 = vst [vmem:[#allocation10_spill] sm:$0xff] %v6615_v25  ;;  %v6617_v0 = vpop.f32.mrb[19].mxu1 }
 0x12b   :  { %6831 = vst [vmem:[#allocation11_spill] sm:$0xff] %v6617_v0 }
 0x12c   :  { %v6619_v45 = vpop.f32.mrb[20].mxu0 }
 0x12d   :  { %6832 = vst [vmem:[#allocation12_spill] sm:$0xff] %v6619_v45  ;;  %v6621_v5 = vpop.f32.mrb[20].mxu1  ;;  %v6623_v17 = vpop.f32.mrb[21].mxu0 }
 0x12e   :  { %6833 = vst [vmem:[#allocation13_spill] sm:$0xff] %v6621_v5  ;;  %6834 = vst [vmem:[#allocation14_spill] sm:$0xff] %v6623_v17  ;;  %v6625_v40 = vpop.f32.mrb[21].mxu1 }
 0x12f   :  { %6835 = vst [vmem:[#allocation15_spill] sm:$0xff] %v6625_v40 }
 0x130   :  { %v6627_v2 = vpop.f32.mrb[22].mxu0 }
 0x131   :  { %6836 = vst [vmem:[#allocation16_spill] sm:$0xff] %v6627_v2  ;;  %v6629_v42 = vpop.f32.mrb[22].mxu1  ;;  %v6631_v58 = vpop.f32.mrb[23].mxu0 }
 0x132   :  { %6837 = vst [vmem:[#allocation17_spill] sm:$0xff] %v6629_v42  ;;  %6838 = vst [vmem:[#allocation18_spill] sm:$0xff] %v6631_v58  ;;  %v6633_v35 = vpop.f32.mrb[23].mxu1 }
 0x133   :  { %6839 = vst [vmem:[#allocation19_spill] sm:$0xff] %v6633_v35 }
 0x134   :  { %v6635_v11 = vpop.f32.mrb[24].mxu0 }
 0x135   :  { %6840 = vst [vmem:[#allocation20_spill] sm:$0xff] %v6635_v11  ;;  %v6637_v63 = vpop.f32.mrb[24].mxu1  ;;  %v6639_v1 = vpop.f32.mrb[25].mxu0 }
 0x136   :  { %6841 = vst [vmem:[#allocation21_spill] sm:$0xff] %v6637_v63  ;;  %6842 = vst [vmem:[#allocation22_spill] sm:$0xff] %v6639_v1  ;;  %v6641_v12 = vpop.f32.mrb[25].mxu1 }
 0x137   :  { %6843 = vst [vmem:[#allocation23_spill] sm:$0xff] %v6641_v12 }
 0x138   :  { %v6643_v50 = vpop.f32.mrb[26].mxu0 }
 0x139   :  { %6844 = vst [vmem:[#allocation24_spill] sm:$0xff] %v6643_v50  ;;  %v6645_v62 = vpop.f32.mrb[26].mxu1  ;;  %v6647_v14 = vpop.f32.mrb[27].mxu0 }
 0x13a   :  { %6845 = vst [vmem:[#allocation25_spill] sm:$0xff] %v6645_v62  ;;  %6846 = vst [vmem:[#allocation26_spill] sm:$0xff] %v6647_v14  ;;  %v6649_v60 = vpop.f32.mrb[27].mxu1 }
 0x13b   :  { %6847 = vst [vmem:[#allocation27_spill] sm:$0xff] %v6649_v60 }
 0x13c   :  { %v6651_v41 = vpop.f32.mrb[28].mxu0 }
 0x13d   :  { %6848 = vst [vmem:[#allocation28_spill] sm:$0xff] %v6651_v41  ;;  %v6653_v27 = vpop.f32.mrb[28].mxu1  ;;  %v6655_v43 = vpop.f32.mrb[29].mxu0 }
 0x13e   :  { %6849 = vst [vmem:[#allocation29_spill] sm:$0xff] %v6653_v27  ;;  %6850 = vst [vmem:[#allocation30_spill] sm:$0xff] %v6655_v43  ;;  %v6657_v7 = vpop.f32.mrb[29].mxu1 }
 0x13f   :  { %6851 = vst [vmem:[#allocation31_spill] sm:$0xff] %v6657_v7 }
 0x140   :  { %v6659_v57 = vpop.f32.mrb[30].mxu0 }
 0x141   :  { %6852 = vst [vmem:[#allocation32_spill] sm:$0xff] %v6659_v57  ;;  %v6661_v20 = vpop.f32.mrb[30].mxu1  ;;  %v6663_v30 = vpop.f32.mrb[31].mxu0 }
 0x142   :  { %6853 = vst [vmem:[#allocation33_spill] sm:$0xff] %v6661_v20  ;;  %6854 = vst [vmem:[#allocation34_spill] sm:$0xff] %v6663_v30  ;;  %v6665_v38 = vpop.f32.mrb[31].mxu1 }
 0x143   :  { %6855 = vst [vmem:[#allocation35_spill] sm:$0xff] %v6665_v38 }
 0x17a   :  { %v2808_v62 = vpop.f32.mrb[32].mxu0  ;;  %v2897_v14 = vpop.f32.mrb[32].mxu1 }
 0x17b   :  { %v2810_v50 = vpop.f32.mrb[33].mxu0  ;;  %v2899_v60 = vpop.f32.mrb[33].mxu1 }
 0x17e   :  { %v2814_v12 = vpop.f32.mrb[34].mxu0 }
 0x17f   :  { %v2903_v41 = vpop.f32.mrb[34].mxu1  ;;  %v2816_v1 = vpop.f32.mrb[35].mxu0 }
 0x180   :  { %v2905_v27 = vpop.f32.mrb[35].mxu1 }
 0x182   :  { %v2820_v63 = vpop.f32.mrb[36].mxu0 }
 0x183   :  { %v4166_v43 = vmul.f32 %v2820_v63, %v2808_v62  ;;  %v2909_v11 = vpop.f32.mrb[36].mxu1  ;;  %v2822_v7 = vpop.f32.mrb[37].mxu0 }
 0x184   :  { %v4168_v35 = vmul.f32 %v2909_v11, %v2897_v14  ;;  %v4167_v57 = vmul.f32 %v2822_v7, %v2810_v50  ;;  %v2911_v58 = vpop.f32.mrb[37].mxu1 }
 0x185   :  { %v4230_v20 = vmul.f32 %v4166_v43, %v6493_v10  ;;  %v4169_v30 = vmul.f32 %v2911_v58, %v2899_v60 }
 0x186   :  { %v4232_v38 = vmul.f32 %v4168_v35, %v6495_v31  ;;  %v4231_v42 = vmul.f32 %v4167_v57, %v6497_v39  ;;  %v2826_v2 = vpop.f32.mrb[38].mxu0  ;;  %v5155_v35 = vmov 1966171168  }
 0x187   :  { %v4233_v40 = vmul.f32 %v4169_v30, %v6501_v56  ;;  %v4198_v17 = vmul.f32 %v2826_v2, %v2814_v12  ;;  %v2915_v5 = vpop.f32.mrb[38].mxu1  ;;  %v2828_v45 = vpop.f32.mrb[39].mxu0  ;;  %v4555_v39 = vunpack.c.l.s4 %v5155_v35 }
 0x188   :  { %v4200_v0 = vmul.f32 %v2915_v5, %v2903_v41  ;;  %v4199_v63 = vmul.f32 %v2828_v45, %v2816_v1  ;;  %v2917_v62 = vpop.f32.mrb[39].mxu1 }
 0x189   :  { %v4262_v11 = vmul.f32 %v4198_v17, %v6506_v9  ;;  %v4201_v50 = vmul.f32 %v2917_v62, %v2905_v27 }
 0x18a   :  { %v4264_v14 = vmul.f32 %v4200_v0, %v6509_v36  ;;  %v4263_v10 = vmul.f32 %v4199_v63, %v6511_v3  ;;  %v2986_v58 = vpop.f32.mrb[40].mxu0  ;;  %v4556_v36 = vunpack.c.0.s8 %v4555_v39 }
 0x18b   :  { %v4294_v31 = vadd.f32 %v4262_v11, %v4230_v20  ;;  %v4265_v60 = vmul.f32 %v4201_v50, %v6515_v23  ;;  %v3075_v56 = vpop.f32.mrb[40].mxu1  ;;  %v2988_v2 = vpop.f32.mrb[41].mxu0  ;;  %v6856_v50 = vld [vmem:[#allocation8_spill] sm:$0xff] }
 0x18c   :  { %v4308_v12 = vadd.f32 %v4264_v14, %v4232_v38  ;;  %v4301_v43 = vadd.f32 %v4263_v10, %v4231_v42  ;;  %v3077_v5 = vpop.f32.mrb[41].mxu1  ;;  %v6676_v14 = vsub.s32 %v4556_v36, %v6856_v50 }
 0x18d   :  { %v4295_v45 = vrot.slane %v4294_v31, 4  ;;  %v4315_v1 = vadd.f32 %v4265_v60, %v4233_v40 }
 0x18e   :  { %v4309_v41 = vrot.slane %v4308_v12, 4  ;;  %v4302_v9 = vrot.slane %v4301_v43, 4  ;;  %v2992_v17 = vpop.f32.mrb[42].mxu0 }
 0x18f   :  { %v4296_v27 = vadd.f32 %v4295_v45, %v4294_v31  ;;  %v4316_v0 = vrot.slane %v4315_v1, 4  ;;  %v3081_v3 = vpop.f32.mrb[42].mxu1  ;;  %v2994_v7 = vpop.f32.mrb[43].mxu0 }
 0x190   :  { %v4310_v57 = vadd.f32 %v4309_v41, %v4308_v12  ;;  %v4303_v20 = vadd.f32 %v4302_v9, %v4301_v43  ;;  %v3083_v30 = vpop.f32.mrb[43].mxu1 }
 0x191   :  { %v4297_v63 = vrot.slane %v4296_v27, 2  ;;  %v4317_v23 = vadd.f32 %v4316_v0, %v4315_v1 }
 0x192   :  { %v4311_v62 = vrot.slane %v4310_v57, 2  ;;  %v4304_v11 = vrot.slane %v4303_v20, 2  ;;  %v2998_v38 = vpop.f32.mrb[44].mxu0 }
 0x193   :  { %v4298_v42 = vadd.f32 %v4297_v63, %v4296_v27  ;;  %v4318_v40 = vrot.slane %v4317_v23, 2  ;;  %v4170_v10 = vmul.f32 %v2998_v38, %v2986_v58  ;;  %v3087_v35 = vpop.f32.mrb[44].mxu1  ;;  %v3000_v31 = vpop.f32.mrb[45].mxu0 }
 0x194   :  { %v4312_v39 = vadd.f32 %v4311_v62, %v4310_v57  ;;  %v4305_v60 = vadd.f32 %v4304_v11, %v4303_v20  ;;  %v4172_v45 = vmul.f32 %v3087_v35, %v3075_v56  ;;  %v4171_v25 = vmul.f32 %v3000_v31, %v2988_v2  ;;  %v3089_v12 = vpop.f32.mrb[45].mxu1 }
 0x195   :  { %v4299_v43 = vrot.slane %v4298_v42, 1  ;;  %v4319_v41 = vadd.f32 %v4318_v40, %v4317_v23  ;;  %v4234_v1 = vmul.f32 %v4170_v10, %v6521_v4  ;;  %v4173_v9 = vmul.f32 %v3089_v12, %v3077_v5 }
 0x196   :  { %v4313_v0 = vrot.slane %v4312_v39, 1  ;;  %v4306_v48 = vrot.slane %v4305_v60, 1  ;;  %v4236_v27 = vmul.f32 %v4172_v45, %v6523_v16  ;;  %v4235_v36 = vmul.f32 %v4171_v25, %v6525_v15  ;;  %v3004_v63 = vpop.f32.mrb[46].mxu0 }
 0x197   :  { %v4300_v58 = vadd.f32 %v4299_v43, %v4298_v42  ;;  %v4320_v38 = vrot.slane %v4319_v41, 1  ;;  %v4237_v57 = vmul.f32 %v4173_v9, %v6529_v47  ;;  %v4202_v20 = vmul.f32 %v3004_v63, %v2992_v17  ;;  %v3093_v56 = vpop.f32.mrb[46].mxu1  ;;  %v3006_v2 = vpop.f32.mrb[47].mxu0 }
 0x198   :  { %v4314_v62 = vadd.f32 %v4313_v0, %v4312_v39  ;;  %v4307_v11 = vadd.f32 %v4306_v48, %v4305_v60  ;;  %v4204_v23 = vmul.f32 %v3093_v56, %v3081_v3  ;;  %v4203_v50 = vmul.f32 %v3006_v2, %v2994_v7  ;;  %v3095_v4 = vpop.f32.mrb[47].mxu1 }
 0x199   :  { %v4321_v5 = vadd.f32 %v4320_v38, %v4319_v41  ;;  %v4266_v40 = vmul.f32 %v4202_v20, %v6535_v52  ;;  %v4205_v10 = vmul.f32 %v3095_v4, %v3083_v30 }
 0x19a   :  { %v4550_v16 = vcombine.low %v4300_v58, %v4307_v11  ;;  %v4268_v15 = vmul.f32 %v4204_v23, %v6537_v53  ;;  %v4267_v25 = vmul.f32 %v4203_v50, %v6539_v8  ;;  %v3164_v42 = vpop.f32.mrb[48].mxu0 }
 0x19b   :  { %v4551_v35 = vcombine.low %v4314_v62, %v4321_v5  ;;  %v4322_v47 = vadd.f32 %v4266_v40, %v4234_v1  ;;  %v4269_v17 = vmul.f32 %v4205_v10, %v6543_v55  ;;  %v3253_v31 = vpop.f32.mrb[48].mxu1  ;;  %v3166_v39 = vpop.f32.mrb[49].mxu0 }
 0x19c   :  { %v6687_v48 = vrot.slane %v4550_v16, %v6676_v14  ;;  %v4336_v3 = vadd.f32 %v4268_v15, %v4236_v27  ;;  %v4329_v7 = vadd.f32 %v4267_v25, %v4235_v36  ;;  %v3255_v60 = vpop.f32.mrb[49].mxu1 }
 0x19d   :  { %v6690_v52 = vrot.slane %v4551_v35, %v6676_v14  ;;  %v4323_v30 = vrot.slane %v4322_v47, 4  ;;  %v4343_v53 = vadd.f32 %v4269_v17, %v4237_v57 }
 0x19e   :  { %v4337_v45 = vrot.slane %v4336_v3, 4  ;;  %v4330_v8 = vrot.slane %v4329_v7, 4  ;;  %v3170_v12 = vpop.f32.mrb[50].mxu0 }
 0x19f   :  { %v4324_v43 = vadd.f32 %v4323_v30, %v4322_v47  ;;  %v4344_v41 = vrot.slane %v4343_v53, 4  ;;  %v3259_v1 = vpop.f32.mrb[50].mxu1  ;;  %v3172_v55 = vpop.f32.mrb[51].mxu0  ;;  %v4582_v9 = vcombine.low %v6687_v48, %v6690_v52 }
 0x1a0   :  { %v4338_v0 = vadd.f32 %v4337_v45, %v4336_v3  ;;  %v4331_v63 = vadd.f32 %v4330_v8, %v4329_v7  ;;  %v3261_v27 = vpop.f32.mrb[51].mxu1 }
 0x1a1   :  { %v4325_v36 = vrot.slane %v4324_v43, 2  ;;  %v4345_v58 = vadd.f32 %v4344_v41, %v4343_v53 }
 0x1a2   :  { %v4339_v38 = vrot.slane %v4338_v0, 2  ;;  %v4332_v20 = vrot.slane %v4331_v63, 2  ;;  %v3176_v56 = vpop.f32.mrb[52].mxu0 }
 0x1a3   :  { %v4326_v2 = vadd.f32 %v4325_v36, %v4324_v43  ;;  %v4346_v57 = vrot.slane %v4345_v58, 2  ;;  %v4174_v62 = vmul.f32 %v3176_v56, %v3164_v42  ;;  %v3265_v11 = vpop.f32.mrb[52].mxu1  ;;  %v3178_v23 = vpop.f32.mrb[53].mxu0 }
 0x1a4   :  { %v4340_v50 = vadd.f32 %v4339_v38, %v4338_v0  ;;  %v4333_v4 = vadd.f32 %v4332_v20, %v4331_v63  ;;  %v4176_v5 = vmul.f32 %v3265_v11, %v3253_v31  ;;  %v4175_v40 = vmul.f32 %v3178_v23, %v3166_v39  ;;  %v3267_v10 = vpop.f32.mrb[53].mxu1 }
 0x1a5   :  { %v4327_v16 = vrot.slane %v4326_v2, 1  ;;  %v4347_v15 = vadd.f32 %v4346_v57, %v4345_v58  ;;  %v4238_v25 = vmul.f32 %v4174_v62, %v6549_v21  ;;  %v4177_v35 = vmul.f32 %v3267_v10, %v3255_v60 }
 0x1a6   :  { %v4341_v47 = vrot.slane %v4340_v50, 1  ;;  %v4334_v17 = vrot.slane %v4333_v4, 1  ;;  %v4240_v3 = vmul.f32 %v4176_v5, %v6551_v18  ;;  %v4239_v7 = vmul.f32 %v4175_v40, %v6553_v49  ;;  %v3182_v30 = vpop.f32.mrb[54].mxu0 }
 0x1a7   :  { %v4328_v42 = vadd.f32 %v4327_v16, %v4326_v2  ;;  %v4348_v53 = vrot.slane %v4347_v15, 1  ;;  %v4241_v45 = vmul.f32 %v4177_v35, %v6557_v29  ;;  %v4206_v8 = vmul.f32 %v3182_v30, %v3170_v12  ;;  %v3271_v31 = vpop.f32.mrb[54].mxu1  ;;  %v3184_v39 = vpop.f32.mrb[55].mxu0 }
 0x1a8   :  { %v4342_v43 = vadd.f32 %v4341_v47, %v4340_v50  ;;  %v4335_v41 = vadd.f32 %v4334_v17, %v4333_v4  ;;  %v4208_v0 = vmul.f32 %v3271_v31, %v3259_v1  ;;  %v4207_v63 = vmul.f32 %v3184_v39, %v3172_v55  ;;  %v3273_v21 = vpop.f32.mrb[55].mxu1 }
 0x1a9   :  { %v4349_v60 = vadd.f32 %v4348_v53, %v4347_v15  ;;  %v4270_v36 = vmul.f32 %v4206_v8, %v6563_v26  ;;  %v4209_v58 = vmul.f32 %v3273_v21, %v3261_v27  ;;  %v4590_v17 = vrot.slane %v4582_v9, %v6676_v14 }
 0x1aa   :  { %v4552_v18 = vcombine.low %v4328_v42, %v4335_v41  ;;  %v4272_v49 = vmul.f32 %v4208_v0, %v6565_v54  ;;  %v4271_v38 = vmul.f32 %v4207_v63, %v6567_v37  ;;  %v3342_v20 = vpop.f32.mrb[56].mxu0 }
 0x1ab   :  { %v4553_v56 = vcombine.low %v4342_v43, %v4349_v60  ;;  %v4350_v29 = vadd.f32 %v4270_v36, %v4238_v25  ;;  %v4273_v12 = vmul.f32 %v4209_v58, %v6571_v34  ;;  %v3431_v2 = vpop.f32.mrb[56].mxu1  ;;  %v3344_v57 = vpop.f32.mrb[57].mxu0 }
 0x1ac   :  { %v4574_v1 = vrot.slane %v4552_v18, %v6676_v14  ;;  %v4364_v55 = vadd.f32 %v4272_v49, %v4240_v3  ;;  %v4357_v62 = vadd.f32 %v4271_v38, %v4239_v7  ;;  %v3433_v11 = vpop.f32.mrb[57].mxu1 }
 0x1ad   :  { %v4581_v26 = vrot.slane %v4553_v56, %v6676_v14  ;;  %v4351_v27 = vrot.slane %v4350_v29, 4  ;;  %v4371_v23 = vadd.f32 %v4273_v12, %v4241_v45 }
 0x1ae   :  { %v4365_v50 = vrot.slane %v4364_v55, 4  ;;  %v4358_v54 = vrot.slane %v4357_v62, 4  ;;  %v3348_v4 = vpop.f32.mrb[58].mxu0 }
 0x1af   :  { %v4352_v37 = vadd.f32 %v4351_v27, %v4350_v29  ;;  %v4372_v5 = vrot.slane %v4371_v23, 4  ;;  %v3437_v40 = vpop.f32.mrb[58].mxu1  ;;  %v3350_v10 = vpop.f32.mrb[59].mxu0  ;;  %v4583_v16 = vcombine.low %v4574_v1, %v4581_v26 }
 0x1b0   :  { %v4366_v34 = vadd.f32 %v4365_v50, %v4364_v55  ;;  %v4359_v15 = vadd.f32 %v4358_v54, %v4357_v62  ;;  %v3439_v25 = vpop.f32.mrb[59].mxu1 }
 0x1b1   :  { %v4353_v35 = vrot.slane %v4352_v37, 2  ;;  %v4373_v47 = vadd.f32 %v4372_v5, %v4371_v23  ;;  %v4597_v3 = vrot.slane %v4583_v16, %v6676_v14 }
 0x1b2   :  { %v4367_v7 = vrot.slane %v4366_v34, 2  ;;  %v4360_v30 = vrot.slane %v4359_v15, 2  ;;  %v3354_v42 = vpop.f32.mrb[60].mxu0 }
 0x1b3   :  { %v4354_v53 = vadd.f32 %v4353_v35, %v4352_v37  ;;  %v4374_v45 = vrot.slane %v4373_v47, 2  ;;  %v4178_v8 = vmul.f32 %v3354_v42, %v3342_v20  ;;  %v3443_v31 = vpop.f32.mrb[60].mxu1  ;;  %v3356_v39 = vpop.f32.mrb[61].mxu0  ;;  %v4598_v43 = vcombine.low %v4590_v17, %v4597_v3 }
 0x1b4   :  { %v4368_v41 = vadd.f32 %v4367_v7, %v4366_v34  ;;  %v4361_v0 = vadd.f32 %v4360_v30, %v4359_v15  ;;  %v4180_v63 = vmul.f32 %v3443_v31, %v3431_v2  ;;  %v4179_v21 = vmul.f32 %v3356_v39, %v3344_v57  ;;  %v3445_v60 = vpop.f32.mrb[61].mxu1 }
 0x1b5   :  { %v4355_v36 = vrot.slane %v4354_v53, 1  ;;  %v4375_v58 = vadd.f32 %v4374_v45, %v4373_v47  ;;  %v4242_v48 = vmul.f32 %v4178_v8, %v6577_v24  ;;  %v4181_v52 = vmul.f32 %v3445_v60, %v3433_v11  ;;  %4750 = vst [vmem:[#allocation5] sm:$0xff] %v4598_v43 }
 0x1b6   :  { %v4369_v9 = vrot.slane %v4368_v41, 1  ;;  %v4362_v18 = vrot.slane %v4361_v0, 1  ;;  %v4244_v49 = vmul.f32 %v4180_v63, %v6579_v46  ;;  %v4243_v38 = vmul.f32 %v4179_v21, %v6581_v32  ;;  %v3360_v20 = vpop.f32.mrb[62].mxu0 }
 0x1b7   :  { %v4356_v56 = vadd.f32 %v4355_v36, %v4354_v53  ;;  %v4376_v29 = vrot.slane %v4375_v58, 1  ;;  %v4245_v12 = vmul.f32 %v4181_v52, %v6585_v33  ;;  %v4210_v2 = vmul.f32 %v3360_v20, %v3348_v4  ;;  %v3449_v57 = vpop.f32.mrb[62].mxu1  ;;  %v3362_v1 = vpop.f32.mrb[63].mxu0 }
 0x1b8   :  { %v4370_v55 = vadd.f32 %v4369_v9, %v4368_v41  ;;  %v4363_v62 = vadd.f32 %v4362_v18, %v4361_v0  ;;  %v4212_v26 = vmul.f32 %v3449_v57, %v3437_v40  ;;  %v4211_v24 = vmul.f32 %v3362_v1, %v3350_v10  ;;  %v3451_v11 = vpop.f32.mrb[63].mxu1 }
 0x1b9   :  { %v4377_v27 = vadd.f32 %v4376_v29, %v4375_v58  ;;  %v4274_v23 = vmul.f32 %v4210_v2, %v6591_v19  ;;  %v4213_v50 = vmul.f32 %v3451_v11, %v3439_v25 }
 0x1ba   :  { %v4599_v46 = vcombine.low %v4356_v56, %v4363_v62  ;;  %v4276_v32 = vmul.f32 %v4212_v26, %v6593_v61  ;;  %v4275_v54 = vmul.f32 %v4211_v24, %v6595_v59  ;;  %v3520_v37 = vpop.f32.mrb[64].mxu0 }
 0x1bb   :  { %v4600_v5 = vcombine.low %v4370_v55, %v4377_v27  ;;  %v4378_v33 = vadd.f32 %v4274_v23, %v4242_v48  ;;  %v4277_v4 = vmul.f32 %v4213_v50, %v6599_v44  ;;  %v3609_v16 = vpop.f32.mrb[64].mxu1  ;;  %v3522_v34 = vpop.f32.mrb[65].mxu0 }
 0x1bc   :  { %v6718_v40 = vrot.slane %v4599_v46, %v6676_v14  ;;  %v4392_v10 = vadd.f32 %v4276_v32, %v4244_v49  ;;  %v4385_v15 = vadd.f32 %v4275_v54, %v4243_v38  ;;  %v3611_v35 = vpop.f32.mrb[65].mxu1 }
 0x1bd   :  { %v6721_v19 = vrot.slane %v4600_v5, %v6676_v14  ;;  %v4379_v25 = vrot.slane %v4378_v33, 4  ;;  %v4399_v61 = vadd.f32 %v4277_v4, %v4245_v12  ;;  %v6857_v4 = vld [vmem:[#allocation9_spill] sm:$0xff] }
 0x1be   :  { %v4393_v47 = vrot.slane %v4392_v10, 4  ;;  %v4386_v59 = vrot.slane %v4385_v15, 4  ;;  %v3526_v17 = vpop.f32.mrb[66].mxu0 }
 0x1bf   :  { %v4380_v3 = vadd.f32 %v4379_v25, %v4378_v33  ;;  %v4400_v7 = vrot.slane %v4399_v61, 4  ;;  %v3615_v30 = vpop.f32.mrb[66].mxu1  ;;  %v3528_v44 = vpop.f32.mrb[67].mxu0  ;;  %v4631_v42 = vcombine.low %v6718_v40, %v6721_v19  ;;  %v6860_v40 = vld [vmem:[#allocation12_spill] sm:$0xff] }
 0x1c0   :  { %v4394_v53 = vadd.f32 %v4393_v47, %v4392_v10  ;;  %v4387_v45 = vadd.f32 %v4386_v59, %v4385_v15  ;;  %v3617_v8 = vpop.f32.mrb[67].mxu1 }
 0x1c1   :  { %v4381_v31 = vrot.slane %v4380_v3, 2  ;;  %v4401_v39 = vadd.f32 %v4400_v7, %v4399_v61 }
 0x1c2   :  { %v4395_v43 = vrot.slane %v4394_v53, 2  ;;  %v4388_v41 = vrot.slane %v4387_v45, 2  ;;  %v3532_v0 = vpop.f32.mrb[68].mxu0 }
 0x1c3   :  { %v4382_v63 = vadd.f32 %v4381_v31, %v4380_v3  ;;  %v4402_v21 = vrot.slane %v4401_v39, 2  ;;  %v4182_v60 = vmul.f32 %v3532_v0, %v3520_v37  ;;  %v3621_v36 = vpop.f32.mrb[68].mxu1  ;;  %v3534_v58 = vpop.f32.mrb[69].mxu0 }
 0x1c4   :  { %v4396_v48 = vadd.f32 %v4395_v43, %v4394_v53  ;;  %v4389_v52 = vadd.f32 %v4388_v41, %v4387_v45  ;;  %v4184_v9 = vmul.f32 %v3621_v36, %v3609_v16  ;;  %v4183_v18 = vmul.f32 %v3534_v58, %v3522_v34  ;;  %v3623_v49 = vpop.f32.mrb[69].mxu1  ;;  %v6858_v16 = vld [vmem:[#allocation10_spill] sm:$0xff] }
 0x1c5   :  { %v4383_v38 = vrot.slane %v4382_v63, 1  ;;  %v4403_v20 = vadd.f32 %v4402_v21, %v4401_v39  ;;  %v4246_v56 = vmul.f32 %v4182_v60, %v6603_v22  ;;  %v4185_v29 = vmul.f32 %v3623_v49, %v3611_v35  ;;  %v6859_v35 = vld [vmem:[#allocation11_spill] sm:$0xff] }
 0x1c6   :  { %v4397_v12 = vrot.slane %v4396_v48, 1  ;;  %v4390_v2 = vrot.slane %v4389_v52, 1  ;;  %v4248_v57 = vmul.f32 %v4184_v9, %v6605_v28  ;;  %v4247_v1 = vmul.f32 %v4183_v18, %v6607_v13  ;;  %v3538_v55 = vpop.f32.mrb[70].mxu0 }
 0x1c7   :  { %v4384_v62 = vadd.f32 %v4383_v38, %v4382_v63  ;;  %v4404_v26 = vrot.slane %v4403_v20, 1  ;;  %v4249_v24 = vmul.f32 %v4185_v29, %v6609_v6  ;;  %v4214_v11 = vmul.f32 %v3538_v55, %v3526_v17  ;;  %v3627_v27 = vpop.f32.mrb[70].mxu1  ;;  %v3540_v23 = vpop.f32.mrb[71].mxu0 }
 0x1c8   :  { %v4398_v50 = vadd.f32 %v4397_v12, %v4396_v48  ;;  %v4391_v46 = vadd.f32 %v4390_v2, %v4389_v52  ;;  %v4216_v32 = vmul.f32 %v3627_v27, %v3615_v30  ;;  %v4215_v54 = vmul.f32 %v3540_v23, %v3528_v44  ;;  %v3629_v22 = vpop.f32.mrb[71].mxu1 }
 0x1c9   :  { %v4405_v37 = vadd.f32 %v4404_v26, %v4403_v20  ;;  %v4278_v5 = vmul.f32 %v4214_v11, %v6611_v51  ;;  %v4217_v33 = vmul.f32 %v3629_v22, %v3617_v8  ;;  %v4639_v48 = vrot.slane %v4631_v42, %v6676_v14 }
 0x1ca   :  { %v4601_v28 = vcombine.low %v4384_v62, %v4391_v46  ;;  %v4280_v13 = vmul.f32 %v4216_v32, %v6857_v4  ;;  %v4279_v34 = vmul.f32 %v4215_v54, %v6858_v16  ;;  %v3698_v10 = vpop.f32.mrb[72].mxu0  ;;  %v6862_v32 = vld [vmem:[#allocation14_spill] sm:$0xff] }
 0x1cb   :  { %v4602_v15 = vcombine.low %v4398_v50, %v4405_v37  ;;  %v4406_v6 = vadd.f32 %v4278_v5, %v4246_v56  ;;  %v4281_v25 = vmul.f32 %v4217_v33, %v6859_v35  ;;  %v3787_v61 = vpop.f32.mrb[72].mxu1  ;;  %v3700_v47 = vpop.f32.mrb[73].mxu0  ;;  %v6861_v50 = vld [vmem:[#allocation13_spill] sm:$0xff]  ;;  %v6863_v33 = vld [vmem:[#allocation15_spill] sm:$0xff] }
 0x1cc   :  { %v4623_v59 = vrot.slane %v4601_v28, %v6676_v14  ;;  %v4420_v17 = vadd.f32 %v4280_v13, %v4248_v57  ;;  %v4413_v3 = vadd.f32 %v4279_v34, %v4247_v1  ;;  %v3789_v7 = vpop.f32.mrb[73].mxu1 }
 0x1cd   :  { %v4630_v51 = vrot.slane %v4602_v15, %v6676_v14  ;;  %v4407_v30 = vrot.slane %v4406_v6, 4  ;;  %v4427_v44 = vadd.f32 %v4281_v25, %v4249_v24 }
 0x1ce   :  { %v4421_v53 = vrot.slane %v4420_v17, 4  ;;  %v4414_v45 = vrot.slane %v4413_v3, 4  ;;  %v3704_v8 = vpop.f32.mrb[74].mxu0 }
 0x1cf   :  { %v4408_v31 = vadd.f32 %v4407_v30, %v4406_v6  ;;  %v4428_v39 = vrot.slane %v4427_v44, 4  ;;  %v3793_v43 = vpop.f32.mrb[74].mxu1  ;;  %v3706_v41 = vpop.f32.mrb[75].mxu0  ;;  %v4632_v0 = vcombine.low %v4623_v59, %v4630_v51  ;;  %v6866_v51 = vld [vmem:[#allocation18_spill] sm:$0xff] }
 0x1d0   :  { %v4422_v63 = vadd.f32 %v4421_v53, %v4420_v17  ;;  %v4415_v21 = vadd.f32 %v4414_v45, %v4413_v3  ;;  %v3795_v60 = vpop.f32.mrb[75].mxu1  ;;  %v6865_v3 = vld [vmem:[#allocation17_spill] sm:$0xff] }
 0x1d1   :  { %v4409_v36 = vrot.slane %v4408_v31, 2  ;;  %v4429_v58 = vadd.f32 %v4428_v39, %v4427_v44  ;;  %v4646_v52 = vrot.slane %v4632_v0, %v6676_v14 }
 0x1d2   :  { %v4423_v9 = vrot.slane %v4422_v63, 2  ;;  %v4416_v18 = vrot.slane %v4415_v21, 2  ;;  %v3710_v49 = vpop.f32.mrb[76].mxu0 }
 0x1d3   :  { %v4410_v38 = vadd.f32 %v4409_v36, %v4408_v31  ;;  %v4430_v20 = vrot.slane %v4429_v58, 2  ;;  %v4186_v56 = vmul.f32 %v3710_v49, %v3698_v10  ;;  %v3799_v29 = vpop.f32.mrb[76].mxu1  ;;  %v3712_v12 = vpop.f32.mrb[77].mxu0  ;;  %v4647_v2 = vcombine.low %v4639_v48, %v4646_v52 }
 0x1d4   :  { %v4424_v57 = vadd.f32 %v4423_v9, %v4422_v63  ;;  %v4417_v1 = vadd.f32 %v4416_v18, %v4415_v21  ;;  %v4188_v55 = vmul.f32 %v3799_v29, %v3787_v61  ;;  %v4187_v62 = vmul.f32 %v3712_v12, %v3700_v47  ;;  %v3801_v26 = vpop.f32.mrb[77].mxu1  ;;  %v6864_v61 = vld [vmem:[#allocation16_spill] sm:$0xff] }
 0x1d5   :  { %v4411_v24 = vrot.slane %v4410_v38, 1  ;;  %v4431_v11 = vadd.f32 %v4430_v20, %v4429_v58  ;;  %v4250_v19 = vmul.f32 %v4186_v56, %v6860_v40  ;;  %v4189_v42 = vmul.f32 %v3801_v26, %v3789_v7  ;;  %4751 = vst [vmem:[#allocation5 + $0x8] sm:$0xff] %v4647_v2 }
 0x1d6   :  { %v4425_v27 = vrot.slane %v4424_v57, 1  ;;  %v4418_v23 = vrot.slane %v4417_v1, 1  ;;  %v4252_v46 = vmul.f32 %v4188_v55, %v6861_v50  ;;  %v4251_v54 = vmul.f32 %v4187_v62, %v6862_v32  ;;  %v3716_v22 = vpop.f32.mrb[78].mxu0 }
 0x1d7   :  { %v4412_v37 = vadd.f32 %v4411_v24, %v4410_v38  ;;  %v4432_v5 = vrot.slane %v4431_v11, 1  ;;  %v4253_v28 = vmul.f32 %v4189_v42, %v6863_v33  ;;  %v4218_v4 = vmul.f32 %v3716_v22, %v3704_v8  ;;  %v3805_v13 = vpop.f32.mrb[78].mxu1  ;;  %v3718_v16 = vpop.f32.mrb[79].mxu0  ;;  %v6867_v8 = vld [vmem:[#allocation19_spill] sm:$0xff] }
 0x1d8   :  { %v4426_v34 = vadd.f32 %v4425_v27, %v4424_v57  ;;  %v4419_v10 = vadd.f32 %v4418_v23, %v4417_v1  ;;  %v4220_v15 = vmul.f32 %v3805_v13, %v3793_v43  ;;  %v4219_v6 = vmul.f32 %v3718_v16, %v3706_v41  ;;  %v3807_v35 = vpop.f32.mrb[79].mxu1  ;;  %v6869_v13 = vld [vmem:[#allocation21_spill] sm:$0xff] }
 0x1d9   :  { %v4433_v25 = vadd.f32 %v4432_v5, %v4431_v11  ;;  %v4282_v47 = vmul.f32 %v4218_v4, %v6864_v61  ;;  %v4221_v59 = vmul.f32 %v3807_v35, %v3795_v60 }
 0x1da   :  { %v4648_v17 = vcombine.low %v4412_v37, %v4419_v10  ;;  %v4284_v7 = vmul.f32 %v4220_v15, %v6865_v3  ;;  %v4283_v30 = vmul.f32 %v4219_v6, %v6866_v51  ;;  %v3876_v44 = vpop.f32.mrb[80].mxu0  ;;  %v6868_v37 = vld [vmem:[#allocation20_spill] sm:$0xff] }
 0x1db   :  { %v4649_v53 = vcombine.low %v4426_v34, %v4433_v25  ;;  %v4434_v45 = vadd.f32 %v4282_v47, %v4250_v19  ;;  %v4285_v31 = vmul.f32 %v4221_v59, %v6867_v8  ;;  %v3965_v39 = vpop.f32.mrb[80].mxu1  ;;  %v3878_v0 = vpop.f32.mrb[81].mxu0  ;;  %v6870_v34 = vld [vmem:[#allocation22_spill] sm:$0xff]  ;;  %v6871_v25 = vld [vmem:[#allocation23_spill] sm:$0xff] }
 0x1dc   :  { %v6749_v43 = vrot.slane %v4648_v17, %v6676_v14  ;;  %v4448_v41 = vadd.f32 %v4284_v7, %v4252_v46  ;;  %v4441_v63 = vadd.f32 %v4283_v30, %v4251_v54  ;;  %v3967_v21 = vpop.f32.mrb[81].mxu1 }
 0x1dd   :  { %v6752_v60 = vrot.slane %v4649_v53, %v6676_v14  ;;  %v4435_v36 = vrot.slane %v4434_v45, 4  ;;  %v4455_v58 = vadd.f32 %v4285_v31, %v4253_v28 }
 0x1de   :  { %v4449_v48 = vrot.slane %v4448_v41, 4  ;;  %v4442_v52 = vrot.slane %v4441_v63, 4  ;;  %v3882_v9 = vpop.f32.mrb[82].mxu0 }
 0x1df   :  { %v4436_v18 = vadd.f32 %v4435_v36, %v4434_v45  ;;  %v4456_v49 = vrot.slane %v4455_v58, 4  ;;  %v3971_v38 = vpop.f32.mrb[82].mxu1  ;;  %v3884_v20 = vpop.f32.mrb[83].mxu0  ;;  %v4680_v56 = vcombine.low %v6749_v43, %v6752_v60  ;;  %v6872_v45 = vld [vmem:[#allocation24_spill] sm:$0xff] }
 0x1e0   :  { %v4450_v29 = vadd.f32 %v4449_v48, %v4448_v41  ;;  %v4443_v12 = vadd.f32 %v4442_v52, %v4441_v63  ;;  %v3973_v2 = vpop.f32.mrb[83].mxu1  ;;  %v6874_v63 = vld [vmem:[#allocation26_spill] sm:$0xff]  ;;  %v6875_v52 = vld [vmem:[#allocation27_spill] sm:$0xff]  ;;  %v6876_v43 = vld [vmem:[#allocation28_spill] sm:$0xff] }
 0x1e1   :  { %v4437_v57 = vrot.slane %v4436_v18, 2  ;;  %v4457_v1 = vadd.f32 %v4456_v49, %v4455_v58 }
 0x1e2   :  { %v4451_v55 = vrot.slane %v4450_v29, 2  ;;  %v4444_v62 = vrot.slane %v4443_v12, 2  ;;  %v3888_v26 = vpop.f32.mrb[84].mxu0 }
 0x1e3   :  { %v4438_v24 = vadd.f32 %v4437_v57, %v4436_v18  ;;  %v4458_v11 = vrot.slane %v4457_v1, 2  ;;  %v4190_v40 = vmul.f32 %v3888_v26, %v3876_v44  ;;  %v3977_v19 = vpop.f32.mrb[84].mxu1  ;;  %v3890_v42 = vpop.f32.mrb[85].mxu0 }
 0x1e4   :  { %v4452_v27 = vadd.f32 %v4451_v55, %v4450_v29  ;;  %v4445_v23 = vadd.f32 %v4444_v62, %v4443_v12  ;;  %v4192_v50 = vmul.f32 %v3977_v19, %v3965_v39  ;;  %v4191_v46 = vmul.f32 %v3890_v42, %v3878_v0  ;;  %v3979_v32 = vpop.f32.mrb[85].mxu1  ;;  %v6873_v0 = vld [vmem:[#allocation25_spill] sm:$0xff] }
 0x1e5   :  { %v4439_v54 = vrot.slane %v4438_v24, 1  ;;  %v4459_v22 = vadd.f32 %v4458_v11, %v4457_v1  ;;  %v4254_v5 = vmul.f32 %v4190_v40, %v6868_v37  ;;  %v4193_v33 = vmul.f32 %v3979_v32, %v3967_v21 }
 0x1e6   :  { %v4453_v28 = vrot.slane %v4452_v27, 1  ;;  %v4446_v4 = vrot.slane %v4445_v23, 1  ;;  %v4256_v16 = vmul.f32 %v4192_v50, %v6869_v13  ;;  %v4255_v10 = vmul.f32 %v4191_v46, %v6870_v34  ;;  %v3894_v15 = vpop.f32.mrb[86].mxu0 }
 0x1e7   :  { %v4440_v6 = vadd.f32 %v4439_v54, %v4438_v24  ;;  %v4460_v35 = vrot.slane %v4459_v22, 1  ;;  %v4257_v61 = vmul.f32 %v4193_v33, %v6871_v25  ;;  %v4222_v47 = vmul.f32 %v3894_v15, %v3882_v9  ;;  %v3983_v59 = vpop.f32.mrb[86].mxu1  ;;  %v3896_v17 = vpop.f32.mrb[87].mxu0 }
 0x1e8   :  { %v4454_v3 = vadd.f32 %v4453_v28, %v4452_v27  ;;  %v4447_v7 = vadd.f32 %v4446_v4, %v4445_v23  ;;  %v4224_v51 = vmul.f32 %v3983_v59, %v3971_v38  ;;  %v4223_v30 = vmul.f32 %v3896_v17, %v3884_v20  ;;  %v3985_v44 = vpop.f32.mrb[87].mxu1 }
 0x1e9   :  { %v4461_v53 = vadd.f32 %v4460_v35, %v4459_v22  ;;  %v4286_v8 = vmul.f32 %v4222_v47, %v6872_v45  ;;  %v4225_v31 = vmul.f32 %v3985_v44, %v3973_v2  ;;  %v4688_v54 = vrot.slane %v4680_v56, %v6676_v14 }
 0x1ea   :  { %v4650_v39 = vcombine.low %v4440_v6, %v4447_v7  ;;  %v4288_v41 = vmul.f32 %v4224_v51, %v6873_v0  ;;  %v4287_v21 = vmul.f32 %v4223_v30, %v6874_v63  ;;  %v4054_v36 = vpop.f32.mrb[88].mxu0  ;;  %v6877_v7 = vld [vmem:[#allocation29_spill] sm:$0xff]  ;;  %v6878_v30 = vld [vmem:[#allocation30_spill] sm:$0xff] }
 0x1eb   :  { %v4651_v58 = vcombine.low %v4454_v3, %v4461_v53  ;;  %v4462_v48 = vadd.f32 %v4286_v8, %v4254_v5  ;;  %v4289_v9 = vmul.f32 %v4225_v31, %v6875_v52  ;;  %v4143_v18 = vpop.f32.mrb[88].mxu1  ;;  %v4056_v49 = vpop.f32.mrb[89].mxu0  ;;  %v6879_v31 = vld [vmem:[#allocation31_spill] sm:$0xff] }
 0x1ec   :  { %v4672_v38 = vrot.slane %v4650_v39, %v6676_v14  ;;  %v4476_v20 = vadd.f32 %v4288_v41, %v4256_v16  ;;  %v4469_v29 = vadd.f32 %v4287_v21, %v4255_v10  ;;  %v4145_v12 = vpop.f32.mrb[89].mxu1 }
 0x1ed   :  { %v4679_v57 = vrot.slane %v4651_v58, %v6676_v14  ;;  %v4463_v2 = vrot.slane %v4462_v48, 4  ;;  %v4483_v1 = vadd.f32 %v4289_v9, %v4257_v61 }
 0x1ee   :  { %v4477_v55 = vrot.slane %v4476_v20, 4  ;;  %v4470_v62 = vrot.slane %v4469_v29, 4  ;;  %v4060_v26 = vpop.f32.mrb[90].mxu0 }
 0x1ef   :  { %v4464_v24 = vadd.f32 %v4463_v2, %v4462_v48  ;;  %v4484_v11 = vrot.slane %v4483_v1, 4  ;;  %v4149_v40 = vpop.f32.mrb[90].mxu1  ;;  %v4062_v19 = vpop.f32.mrb[91].mxu0  ;;  %v4681_v42 = vcombine.low %v4672_v38, %v4679_v57  ;;  %v6882_v57 = vld [vmem:[#allocation34_spill] sm:$0xff] }
 0x1f0   :  { %v4478_v27 = vadd.f32 %v4477_v55, %v4476_v20  ;;  %v4471_v23 = vadd.f32 %v4470_v62, %v4469_v29  ;;  %v4151_v50 = vpop.f32.mrb[91].mxu1  ;;  %v6881_v29 = vld [vmem:[#allocation33_spill] sm:$0xff]  ;;  %v6883_v62 = vld [vmem:[#allocation35_spill] sm:$0xff] }
 0x1f1   :  { %v4465_v46 = vrot.slane %v4464_v24, 2  ;;  %v4485_v32 = vadd.f32 %v4484_v11, %v4483_v1  ;;  %v4695_v22 = vrot.slane %v4681_v42, %v6676_v14 }
 0x1f2   :  { %v4479_v37 = vrot.slane %v4478_v27, 2  ;;  %v4472_v5 = vrot.slane %v4471_v23, 2  ;;  %v4066_v33 = vpop.f32.mrb[92].mxu0 }
 0x1f3   :  { %v4466_v28 = vadd.f32 %v4465_v46, %v4464_v24  ;;  %v4486_v4 = vrot.slane %v4485_v32, 2  ;;  %v4194_v13 = vmul.f32 %v4066_v33, %v4054_v36  ;;  %v4155_v16 = vpop.f32.mrb[92].mxu1  ;;  %v4068_v34 = vpop.f32.mrb[93].mxu0  ;;  %v4696_v10 = vcombine.low %v4688_v54, %v4695_v22 }
 0x1f4   :  { %v4480_v15 = vadd.f32 %v4479_v37, %v4478_v27  ;;  %v4473_v6 = vadd.f32 %v4472_v5, %v4471_v23  ;;  %v4196_v35 = vmul.f32 %v4155_v16, %v4143_v18  ;;  %v4195_v25 = vmul.f32 %v4068_v34, %v4056_v49  ;;  %v4157_v61 = vpop.f32.mrb[93].mxu1  ;;  %v6880_v18 = vld [vmem:[#allocation32_spill] sm:$0xff] }
 0x1f5   :  { %v4467_v47 = vrot.slane %v4466_v28, 1  ;;  %v4487_v59 = vadd.f32 %v4486_v4, %v4485_v32  ;;  %v4258_v60 = vmul.f32 %v4194_v13, %v6876_v43  ;;  %v4197_v56 = vmul.f32 %v4157_v61, %v4145_v12  ;;  %4752 = vst [vmem:[#allocation5 + $0x10] sm:$0xff] %v4696_v10 }
 0x1f6   :  { %v4481_v17 = vrot.slane %v4480_v15, 1  ;;  %v4474_v3 = vrot.slane %v4473_v6, 1  ;;  %v4260_v51 = vmul.f32 %v4196_v35, %v6877_v7  ;;  %v4259_v44 = vmul.f32 %v4195_v25, %v6878_v30  ;;  %v4072_v53 = vpop.f32.mrb[94].mxu0 }
 0x1f7   :  { %v4468_v45 = vadd.f32 %v4467_v47, %v4466_v28  ;;  %v4488_v8 = vrot.slane %v4487_v59, 1  ;;  %v4261_v39 = vmul.f32 %v4197_v56, %v6879_v31  ;;  %v4226_v0 = vmul.f32 %v4072_v53, %v4060_v26  ;;  %v4161_v41 = vpop.f32.mrb[94].mxu1  ;;  %v4074_v63 = vpop.f32.mrb[95].mxu0 }
 0x1f8   :  { %v4482_v21 = vadd.f32 %v4481_v17, %v4480_v15  ;;  %v4475_v36 = vadd.f32 %v4474_v3, %v4473_v6  ;;  %v4228_v58 = vmul.f32 %v4161_v41, %v4149_v40  ;;  %v4227_v48 = vmul.f32 %v4074_v63, %v4062_v19  ;;  %v4163_v52 = vpop.f32.mrb[95].mxu1 }
 0x1f9   :  { %v4489_v9 = vadd.f32 %v4488_v8, %v4487_v59  ;;  %v4290_v49 = vmul.f32 %v4226_v0, %v6880_v18  ;;  %v4229_v38 = vmul.f32 %v4163_v52, %v4151_v50 }
 0x1fa   :  { %v4697_v20 = vcombine.low %v4468_v45, %v4475_v36  ;;  %v4292_v12 = vmul.f32 %v4228_v58, %v6881_v29  ;;  %v4291_v2 = vmul.f32 %v4227_v48, %v6882_v57 }
 0x1fb   :  { %v4698_v1 = vcombine.low %v4482_v21, %v4489_v9  ;;  %v4490_v55 = vadd.f32 %v4290_v49, %v4258_v60  ;;  %v4293_v26 = vmul.f32 %v4229_v38, %v6883_v62 }
 0x1fc   :  { %v4707_v24 = vrot.slane %v4697_v20, %v6676_v14  ;;  %v4504_v11 = vadd.f32 %v4292_v12, %v4260_v51  ;;  %v4497_v42 = vadd.f32 %v4291_v2, %v4259_v44 }
 0x1fd   :  { %v4714_v40 = vrot.slane %v4698_v1, %v6676_v14  ;;  %v4491_v19 = vrot.slane %v4490_v55, 4  ;;  %v4511_v27 = vadd.f32 %v4293_v26, %v4261_v39 }
 0x1fe   :  { %v4505_v23 = vrot.slane %v4504_v11, 4  ;;  %v4498_v46 = vrot.slane %v4497_v42, 4 }
 0x1ff   :  { %v4492_v50 = vadd.f32 %v4491_v19, %v4490_v55  ;;  %v4512_v32 = vrot.slane %v4511_v27, 4  ;;  %v4729_v54 = vcombine.low %v4707_v24, %v4714_v40 }
 0x200   :  { %v4506_v22 = vadd.f32 %v4505_v23, %v4504_v11  ;;  %v4499_v37 = vadd.f32 %v4498_v46, %v4497_v42 }
 0x201   :  { %v4493_v5 = vrot.slane %v4492_v50, 2  ;;  %v4513_v33 = vadd.f32 %v4512_v32, %v4511_v27  ;;  %v4737_v30 = vrot.slane %v4729_v54, %v6676_v14 }
 0x202   :  { %v4507_v28 = vrot.slane %v4506_v22, 2  ;;  %v4500_v4 = vrot.slane %v4499_v37, 2 }
 0x203   :  { %v4494_v13 = vadd.f32 %v4493_v5, %v4492_v50  ;;  %v4514_v16 = vrot.slane %v4513_v33, 2 }
 0x204   :  { %v4508_v34 = vadd.f32 %v4507_v28, %v4506_v22  ;;  %v4501_v10 = vadd.f32 %v4500_v4, %v4499_v37 }
 0x205   :  { %v4495_v15 = vrot.slane %v4494_v13, 1  ;;  %v4515_v6 = vadd.f32 %v4514_v16, %v4513_v33 }
 0x206   :  { %v4509_v35 = vrot.slane %v4508_v34, 1  ;;  %v4502_v25 = vrot.slane %v4501_v10, 1 }
 0x207   :  { %v4496_v61 = vadd.f32 %v4495_v15, %v4494_v13  ;;  %v4516_v47 = vrot.slane %v4515_v6, 1 }
 0x208   :  { %v4510_v59 = vadd.f32 %v4509_v35, %v4508_v34  ;;  %v4503_v43 = vadd.f32 %v4502_v25, %v4501_v10 }
 0x209   :  { %v4517_v60 = vadd.f32 %v4516_v47, %v4515_v6 }
 0x20a   :  { %v4699_v56 = vcombine.low %v4496_v61, %v4503_v43 }
 0x20b   :  { %v4700_v17 = vcombine.low %v4510_v59, %v4517_v60 }
 0x20c   :  { %v4721_v3 = vrot.slane %v4699_v56, %v6676_v14 }
 0x20d   :  { %v4728_v7 = vrot.slane %v4700_v17, %v6676_v14 }
 0x20f   :  { %v4730_v51 = vcombine.low %v4721_v3, %v4728_v7 }
 0x211   :  { %v4744_v44 = vrot.slane %v4730_v51, %v6676_v14 }
 0x213   :  { %v4745_v53 = vcombine.low %v4737_v30, %v4744_v44 }
 0x215   :  { %4753 = vst [vmem:[#allocation5 + $0x18] sm:$0xff] %v4745_v53 }
 0x216   :  { %5131 = shalt.err (!%p5128_p12)
}
 0x217   :  { %s5132_s16 = scalar_lea.hbm %s6801_s4, 512 }
 0x218   :  { %p5133_p13 = scmp.ne.s32.totalorder %s6801_s4, %s5132_s16  ;;  %p5136_p0 = scmp.lt.u32.totalorder %s5132_s16, %s6801_s4 }
 0x21a   :  { %p5138_p1 = pnand %p5136_p0, %p5133_p13 }
 0x21c   :  { %5141 = shalt.err (!%p5138_p1)
}
 0x21d   :  { %4763 = dma.vmem_to_hbm [thread:$0]  %s4761_s12, 512, %s6801_s4, [#allocation4]  }
 0x21e   :  { %5144 = dma.done.wait [#allocation4], 512  }
 0x21f   :  { %5145 = vsyncadd [#allocation4], 4294966784 }
 0x220   :  { %4767 = vsyncpa [#allocation3], 1 }
 0x221   :  { %4768 = vsyncpa [#allocation4], 1 }

</bundles_post_ra>
